<compile_context>
chip_gen: v7x
topology: tpu7x:2x2x1
jax: 0.10.0
libtpu: 0.0.40
codegen_flags: <defaults>
</compile_context>

<pallas_src>
import numpy as np
import jax
import jax.numpy as jnp
from jax.experimental import pallas as pl
from jax.experimental.pallas import tpu as pltpu


# --------------------------------------------------------------------------
# Host-side helpers: Gaussian params + banded blur/subsample matrices.
# --------------------------------------------------------------------------
def _gaussian_params(scale):
    """1-D normalized Gaussian taps, left pad, integer stride (matches PyTorch)."""
    sigma = (1.0 / scale - 1.0) / 2.0
    ks = 2 * int(round(sigma * 4)) + 1
    ka = ks // 2
    stride = int(1.0 / scale)
    t = np.arange(ks, dtype=np.float64)
    w = np.exp(-((t - (ks - 1) / 2.0) ** 2) / (2.0 * sigma * sigma))
    w = w / w.sum()  # outer(w,w)/sum == outer(w/sum, w/sum): exactly separable
    return w, ka, stride


def _band_matrix(n_in, n_out, stride, w, ka):
    """G[c, j] = w[c - j*stride + ka] if in range else 0 (zero padding built in)."""
    K = len(w)
    G = np.zeros((n_in, n_out), dtype=np.float64)
    for j in range(n_out):
        for v in range(K):
            c = j * stride + v - ka
            if 0 <= c < n_in:
                G[c, j] += w[v]
    return G.astype(np.float32)


def _pick_cb(BC, row_extents, cap=8):
    """Images per grid block: largest divisor of B*C <= cap keeping every
    block sublane extent a multiple of 8 (or fall back to the full array)."""
    if BC <= cap:
        return BC
    for d in range(min(cap, BC), 0, -1):
        if BC % d != 0:
            continue
        if all((d * e) % 8 == 0 for e in row_extents):
            return d
    return BC


# --------------------------------------------------------------------------
# Pallas kernel: one input block; per scale one (Gw, GhT) pair and one output.
# --------------------------------------------------------------------------
def _make_pyramide_kernel(n_scales, cb, H, hs_list):
    def kernel(x_ref, *refs):
        g_refs = refs[: 2 * n_scales]
        out_refs = refs[2 * n_scales:]
        x = x_ref[...].astype(jnp.float32)          # (CB*H, W), VMEM resident once
        for k in range(n_scales):
            gw = g_refs[2 * k][...]                  # (W, Ws_k)
            ghT = g_refs[2 * k + 1][...]             # (Hs_k, H)
            Hs = hs_list[k]
            # Horizontal blur + column subsample, shared across the CB images (MXU).
            hb = jnp.dot(x, gw, preferred_element_type=jnp.float32)   # (CB*H, Ws_k)
            # Vertical blur + row subsample, per image (avoids block-diag waste).
            for j in range(cb):
                oj = jnp.dot(ghT, hb[j * H:(j + 1) * H, :],
                             preferred_element_type=jnp.float32)      # (Hs_k, Ws_k)
                out_refs[k][pl.ds(j * Hs, Hs), :] = oj.astype(out_refs[k].dtype)
    return kernel


# --------------------------------------------------------------------------
# Wrapper: ImagePyramide.forward
# --------------------------------------------------------------------------
def image_pyramide(x, scales, cb_cap=8):
    """x: (B, C, H, W). Returns {'prediction_<scale>': array} like the nn.Module."""
    B, C, H, W = x.shape
    BC = B * C
    dtype = x.dtype

    out = {}
    down_scales = [s for s in scales if s != 1.0]
    for s in scales:
        if s == 1.0:
            out[f"prediction_{s}"] = x  # identity branch of AntiAliasInterpolation2d
    if not down_scales:
        return out

    # Per-scale static params.
    params = []
    for s in down_scales:
        w, ka, stride = _gaussian_params(s)
        Hs = (H + stride - 1) // stride
        Ws = (W + stride - 1) // stride
        params.append((s, w, ka, stride, Hs, Ws))

    CB = _pick_cb(BC, [H] + [p[4] for p in params], cap=cb_cap)
    grid = (BC // CB,)

    # Flatten (B, C, H) onto the sublane axis: rows are image-major, W on lanes.
    x2 = x.reshape(BC * H, W)

    operands = [x2]
    in_specs = [pl.BlockSpec((CB * H, W), lambda i: (i, 0))]
    out_shapes = []
    out_specs = []
    hs_list = []
    for (s, w, ka, stride, Hs, Ws) in params:
        gw = _band_matrix(W, Ws, stride, w, ka)                      # (W, Ws)
        ghT = np.ascontiguousarray(_band_matrix(H, Hs, stride, w, ka).T)  # (Hs, H)
        operands += [jnp.asarray(gw), jnp.asarray(ghT)]
        in_specs += [
            pl.BlockSpec((W, Ws), lambda i: (0, 0)),
            pl.BlockSpec((Hs, H), lambda i: (0, 0)),
        ]
        out_shapes.append(jax.ShapeDtypeStruct((BC * Hs, Ws), dtype))
        out_specs.append(pl.BlockSpec((CB * Hs, Ws), lambda i: (i, 0)))
        hs_list.append(Hs)

    results = pl.pallas_call(
        _make_pyramide_kernel(len(down_scales), CB, H, hs_list),
        out_shape=tuple(out_shapes),
        grid_spec=pltpu.PrefetchScalarGridSpec(
            num_scalar_prefetch=0,
            grid=grid,
            in_specs=in_specs,
            out_specs=tuple(out_specs),
        ),
        compiler_params=pltpu.CompilerParams(
            dimension_semantics=("parallel",),  # shards image blocks across TCs on v7x
        ),
    )(*operands)

    if not isinstance(results, (tuple, list)):
        results = (results,)
    for (s, w, ka, stride, Hs, Ws), r in zip(params, results):
        out[f"prediction_{s}"] = r.reshape(B, C, Hs, Ws)
    return out


# --------------------------------------------------------------------------
# Pure numpy reference (pad -> full separable blur -> strided subsample),
# mirroring F.pad + depthwise conv2d + ::stride of the PyTorch module.
# --------------------------------------------------------------------------
def _ref_pyramide(x_np, scales):
    out = {}
    B, C, H, W = x_np.shape
    for s in scales:
        key = f"prediction_{s}"
        if s == 1.0:
            out[key] = x_np.astype(np.float32).copy()
            continue
        w, ka, stride = _gaussian_params(s)
        K = len(w)
        xp = np.pad(x_np.astype(np.float64), ((0, 0), (0, 0), (ka, ka), (ka, ka)))
        hb = np.zeros((B, C, H + 2 * ka, W), dtype=np.float64)
        for v in range(K):
            hb += w[v] * xp[:, :, :, v:v + W]
        fb = np.zeros((B, C, H, W), dtype=np.float64)
        for u in range(K):
            fb += w[u] * hb[:, :, u:u + H, :]
        out[key] = fb[:, :, ::stride, ::stride].astype(np.float32)
    return out


if __name__ == "__main__":
    key = jax.random.PRNGKey(0)
    B, C, H, W = 2, 3, 64, 64
    scales = (1, 0.5, 0.25, 0.125)  # typical FOMM/EAMM pyramid config

    x = jax.random.normal(key, (B, C, H, W), dtype=jnp.float32)
    refs = _ref_pyramide(np.asarray(x), scales)

    # Default blocking (all 6 images in one grid step) ...
    outs = jax.block_until_ready(image_pyramide(x, scales))
    # ... and a multi-step grid (2 images / step) to exercise the pipeline.
    outs_small = jax.block_until_ready(image_pyramide(x, scales, cb_cap=2))

    for name, got_dict in (("cb=max", outs), ("cb=2", outs_small)):
        for k, ref in refs.items():
            got = np.asarray(got_dict[k])
            assert got.shape == ref.shape, (name, k, got.shape, ref.shape)
            assert np.allclose(got, ref, rtol=1e-2, atol=1e-2), (name, k)

    print("KERNEL_OK")
</pallas_src>

<mosaic_0001>
module attributes {stable_mosaic.version = 11 : i64} {
  func.func @kernel(%arg0: i32, %arg1: memref<384x64xf32, #tpu.memory_space<vmem>>, %arg2: memref<64x32xf32, #tpu.memory_space<vmem>>, %arg3: memref<32x64xf32, #tpu.memory_space<vmem>>, %arg4: memref<64x16xf32, #tpu.memory_space<vmem>>, %arg5: memref<16x64xf32, #tpu.memory_space<vmem>>, %arg6: memref<64x8xf32, #tpu.memory_space<vmem>>, %arg7: memref<8x64xf32, #tpu.memory_space<vmem>>, %arg8: memref<192x32xf32, #tpu.memory_space<vmem>>, %arg9: memref<96x16xf32, #tpu.memory_space<vmem>>, %arg10: memref<48x8xf32, #tpu.memory_space<vmem>>) attributes {dimension_semantics = [#tpu.dimension_semantics<parallel>], iteration_bounds = array<i64: 1>, scalar_prefetch = 0 : i64, scratch_operands = 0 : i64, tpu.core_type = #tpu.core_type<tc>, window_params = [{transform_indices = @transform_0, window_bounds = array<i64: 384, 64>}, {pipeline_mode = #tpu.pipeline_mode<synchronous>, transform_indices = @transform_1, window_bounds = array<i64: 64, 32>}, {pipeline_mode = #tpu.pipeline_mode<synchronous>, transform_indices = @transform_2, window_bounds = array<i64: 32, 64>}, {pipeline_mode = #tpu.pipeline_mode<synchronous>, transform_indices = @transform_3, window_bounds = array<i64: 64, 16>}, {pipeline_mode = #tpu.pipeline_mode<synchronous>, transform_indices = @transform_4, window_bounds = array<i64: 16, 64>}, {pipeline_mode = #tpu.pipeline_mode<synchronous>, transform_indices = @transform_5, window_bounds = array<i64: 64, 8>}, {pipeline_mode = #tpu.pipeline_mode<synchronous>, transform_indices = @transform_6, window_bounds = array<i64: 8, 64>}, {transform_indices = @transform_7, window_bounds = array<i64: 192, 32>}, {transform_indices = @transform_8, window_bounds = array<i64: 96, 16>}, {transform_indices = @transform_9, window_bounds = array<i64: 48, 8>}]} {
    %c0 = arith.constant 0 : index
    %c0_0 = arith.constant 0 : index
    %0 = vector.load %arg1[%c0, %c0_0] : memref<384x64xf32, #tpu.memory_space<vmem>>, vector<384x64xf32>
    %c0_1 = arith.constant 0 : index
    %c0_2 = arith.constant 0 : index
    %1 = vector.load %arg2[%c0_1, %c0_2] : memref<64x32xf32, #tpu.memory_space<vmem>>, vector<64x32xf32>
    %c0_3 = arith.constant 0 : index
    %c0_4 = arith.constant 0 : index
    %2 = vector.load %arg3[%c0_3, %c0_4] : memref<32x64xf32, #tpu.memory_space<vmem>>, vector<32x64xf32>
    %cst = arith.constant dense<0.000000e+00> : vector<384x32xf32>
    %3 = tpu.matmul %0, %1, %cst {dimension_numbers = #tpu.dot_dimension_numbers<[1], [0], [0], [1], [0, 0, 1, 1], [], []>} : vector<384x64xf32>, vector<64x32xf32>, vector<384x32xf32> -> vector<384x32xf32>
    %4 = vector.extract_strided_slice %3 {offsets = [0, 0], sizes = [64, 32], strides = [1, 1]} : vector<384x32xf32> to vector<64x32xf32>
    %cst_5 = arith.constant dense<0.000000e+00> : vector<32x32xf32>
    %5 = tpu.matmul %2, %4, %cst_5 {dimension_numbers = #tpu.dot_dimension_numbers<[1], [0], [0], [1], [0, 0, 1, 1], [], []>} : vector<32x64xf32>, vector<64x32xf32>, vector<32x32xf32> -> vector<32x32xf32>
    %c0_6 = arith.constant 0 : index
    %c0_7 = arith.constant 0 : index
    %6 = vector.load %arg8[%c0_6, %c0_7] : memref<192x32xf32, #tpu.memory_space<vmem>>, vector<32x32xf32>
    tpu.vector_store %arg8[%c0_6, %c0_7], %5 {strides = array<i32>} : memref<192x32xf32, #tpu.memory_space<vmem>>, vector<32x32xf32>,
    %7 = vector.extract_strided_slice %3 {offsets = [64, 0], sizes = [64, 32], strides = [1, 1]} : vector<384x32xf32> to vector<64x32xf32>
    %cst_8 = arith.constant dense<0.000000e+00> : vector<32x32xf32>
    %8 = tpu.matmul %2, %7, %cst_8 {dimension_numbers = #tpu.dot_dimension_numbers<[1], [0], [0], [1], [0, 0, 1, 1], [], []>} : vector<32x64xf32>, vector<64x32xf32>, vector<32x32xf32> -> vector<32x32xf32>
    %c32 = arith.constant 32 : index
    %c0_9 = arith.constant 0 : index
    %9 = vector.load %arg8[%c32, %c0_9] : memref<192x32xf32, #tpu.memory_space<vmem>>, vector<32x32xf32>
    tpu.vector_store %arg8[%c32, %c0_9], %8 {strides = array<i32>} : memref<192x32xf32, #tpu.memory_space<vmem>>, vector<32x32xf32>,
    %10 = vector.extract_strided_slice %3 {offsets = [128, 0], sizes = [64, 32], strides = [1, 1]} : vector<384x32xf32> to vector<64x32xf32>
    %cst_10 = arith.constant dense<0.000000e+00> : vector<32x32xf32>
    %11 = tpu.matmul %2, %10, %cst_10 {dimension_numbers = #tpu.dot_dimension_numbers<[1], [0], [0], [1], [0, 0, 1, 1], [], []>} : vector<32x64xf32>, vector<64x32xf32>, vector<32x32xf32> -> vector<32x32xf32>
    %c64 = arith.constant 64 : index
    %c0_11 = arith.constant 0 : index
    %12 = vector.load %arg8[%c64, %c0_11] : memref<192x32xf32, #tpu.memory_space<vmem>>, vector<32x32xf32>
    tpu.vector_store %arg8[%c64, %c0_11], %11 {strides = array<i32>} : memref<192x32xf32, #tpu.memory_space<vmem>>, vector<32x32xf32>,
    %13 = vector.extract_strided_slice %3 {offsets = [192, 0], sizes = [64, 32], strides = [1, 1]} : vector<384x32xf32> to vector<64x32xf32>
    %cst_12 = arith.constant dense<0.000000e+00> : vector<32x32xf32>
    %14 = tpu.matmul %2, %13, %cst_12 {dimension_numbers = #tpu.dot_dimension_numbers<[1], [0], [0], [1], [0, 0, 1, 1], [], []>} : vector<32x64xf32>, vector<64x32xf32>, vector<32x32xf32> -> vector<32x32xf32>
    %c96 = arith.constant 96 : index
    %c0_13 = arith.constant 0 : index
    %15 = vector.load %arg8[%c96, %c0_13] : memref<192x32xf32, #tpu.memory_space<vmem>>, vector<32x32xf32>
    tpu.vector_store %arg8[%c96, %c0_13], %14 {strides = array<i32>} : memref<192x32xf32, #tpu.memory_space<vmem>>, vector<32x32xf32>,
    %16 = vector.extract_strided_slice %3 {offsets = [256, 0], sizes = [64, 32], strides = [1, 1]} : vector<384x32xf32> to vector<64x32xf32>
    %cst_14 = arith.constant dense<0.000000e+00> : vector<32x32xf32>
    %17 = tpu.matmul %2, %16, %cst_14 {dimension_numbers = #tpu.dot_dimension_numbers<[1], [0], [0], [1], [0, 0, 1, 1], [], []>} : vector<32x64xf32>, vector<64x32xf32>, vector<32x32xf32> -> vector<32x32xf32>
    %c128 = arith.constant 128 : index
    %c0_15 = arith.constant 0 : index
    %18 = vector.load %arg8[%c128, %c0_15] : memref<192x32xf32, #tpu.memory_space<vmem>>, vector<32x32xf32>
    tpu.vector_store %arg8[%c128, %c0_15], %17 {strides = array<i32>} : memref<192x32xf32, #tpu.memory_space<vmem>>, vector<32x32xf32>,
    %19 = vector.extract_strided_slice %3 {offsets = [320, 0], sizes = [64, 32], strides = [1, 1]} : vector<384x32xf32> to vector<64x32xf32>
    %cst_16 = arith.constant dense<0.000000e+00> : vector<32x32xf32>
    %20 = tpu.matmul %2, %19, %cst_16 {dimension_numbers = #tpu.dot_dimension_numbers<[1], [0], [0], [1], [0, 0, 1, 1], [], []>} : vector<32x64xf32>, vector<64x32xf32>, vector<32x32xf32> -> vector<32x32xf32>
    %c160 = arith.constant 160 : index
    %c0_17 = arith.constant 0 : index
    %21 = vector.load %arg8[%c160, %c0_17] : memref<192x32xf32, #tpu.memory_space<vmem>>, vector<32x32xf32>
    tpu.vector_store %arg8[%c160, %c0_17], %20 {strides = array<i32>} : memref<192x32xf32, #tpu.memory_space<vmem>>, vector<32x32xf32>,
    %c0_18 = arith.constant 0 : index
    %c0_19 = arith.constant 0 : index
    %22 = vector.load %arg4[%c0_18, %c0_19] : memref<64x16xf32, #tpu.memory_space<vmem>>, vector<64x16xf32>
    %c0_20 = arith.constant 0 : index
    %c0_21 = arith.constant 0 : index
    %23 = vector.load %arg5[%c0_20, %c0_21] : memref<16x64xf32, #tpu.memory_space<vmem>>, vector<16x64xf32>
    %cst_22 = arith.constant dense<0.000000e+00> : vector<384x16xf32>
    %24 = tpu.matmul %0, %22, %cst_22 {dimension_numbers = #tpu.dot_dimension_numbers<[1], [0], [0], [1], [0, 0, 1, 1], [], []>} : vector<384x64xf32>, vector<64x16xf32>, vector<384x16xf32> -> vector<384x16xf32>
    %25 = vector.extract_strided_slice %24 {offsets = [0, 0], sizes = [64, 16], strides = [1, 1]} : vector<384x16xf32> to vector<64x16xf32>
    %cst_23 = arith.constant dense<0.000000e+00> : vector<16x16xf32>
    %26 = tpu.matmul %23, %25, %cst_23 {dimension_numbers = #tpu.dot_dimension_numbers<[1], [0], [0], [1], [0, 0, 1, 1], [], []>} : vector<16x64xf32>, vector<64x16xf32>, vector<16x16xf32> -> vector<16x16xf32>
    %c0_24 = arith.constant 0 : index
    %c0_25 = arith.constant 0 : index
    %27 = vector.load %arg9[%c0_24, %c0_25] : memref<96x16xf32, #tpu.memory_space<vmem>>, vector<16x16xf32>
    tpu.vector_store %arg9[%c0_24, %c0_25], %26 {strides = array<i32>} : memref<96x16xf32, #tpu.memory_space<vmem>>, vector<16x16xf32>,
    %28 = vector.extract_strided_slice %24 {offsets = [64, 0], sizes = [64, 16], strides = [1, 1]} : vector<384x16xf32> to vector<64x16xf32>
    %cst_26 = arith.constant dense<0.000000e+00> : vector<16x16xf32>
    %29 = tpu.matmul %23, %28, %cst_26 {dimension_numbers = #tpu.dot_dimension_numbers<[1], [0], [0], [1], [0, 0, 1, 1], [], []>} : vector<16x64xf32>, vector<64x16xf32>, vector<16x16xf32> -> vector<16x16xf32>
    %c16 = arith.constant 16 : index
    %c0_27 = arith.constant 0 : index
    %30 = vector.load %arg9[%c16, %c0_27] : memref<96x16xf32, #tpu.memory_space<vmem>>, vector<16x16xf32>
    tpu.vector_store %arg9[%c16, %c0_27], %29 {strides = array<i32>} : memref<96x16xf32, #tpu.memory_space<vmem>>, vector<16x16xf32>,
    %31 = vector.extract_strided_slice %24 {offsets = [128, 0], sizes = [64, 16], strides = [1, 1]} : vector<384x16xf32> to vector<64x16xf32>
    %cst_28 = arith.constant dense<0.000000e+00> : vector<16x16xf32>
    %32 = tpu.matmul %23, %31, %cst_28 {dimension_numbers = #tpu.dot_dimension_numbers<[1], [0], [0], [1], [0, 0, 1, 1], [], []>} : vector<16x64xf32>, vector<64x16xf32>, vector<16x16xf32> -> vector<16x16xf32>
    %c32_29 = arith.constant 32 : index
    %c0_30 = arith.constant 0 : index
    %33 = vector.load %arg9[%c32_29, %c0_30] : memref<96x16xf32, #tpu.memory_space<vmem>>, vector<16x16xf32>
    tpu.vector_store %arg9[%c32_29, %c0_30], %32 {strides = array<i32>} : memref<96x16xf32, #tpu.memory_space<vmem>>, vector<16x16xf32>,
    %34 = vector.extract_strided_slice %24 {offsets = [192, 0], sizes = [64, 16], strides = [1, 1]} : vector<384x16xf32> to vector<64x16xf32>
    %cst_31 = arith.constant dense<0.000000e+00> : vector<16x16xf32>
    %35 = tpu.matmul %23, %34, %cst_31 {dimension_numbers = #tpu.dot_dimension_numbers<[1], [0], [0], [1], [0, 0, 1, 1], [], []>} : vector<16x64xf32>, vector<64x16xf32>, vector<16x16xf32> -> vector<16x16xf32>
    %c48 = arith.constant 48 : index
    %c0_32 = arith.constant 0 : index
    %36 = vector.load %arg9[%c48, %c0_32] : memref<96x16xf32, #tpu.memory_space<vmem>>, vector<16x16xf32>
    tpu.vector_store %arg9[%c48, %c0_32], %35 {strides = array<i32>} : memref<96x16xf32, #tpu.memory_space<vmem>>, vector<16x16xf32>,
    %37 = vector.extract_strided_slice %24 {offsets = [256, 0], sizes = [64, 16], strides = [1, 1]} : vector<384x16xf32> to vector<64x16xf32>
    %cst_33 = arith.constant dense<0.000000e+00> : vector<16x16xf32>
    %38 = tpu.matmul %23, %37, %cst_33 {dimension_numbers = #tpu.dot_dimension_numbers<[1], [0], [0], [1], [0, 0, 1, 1], [], []>} : vector<16x64xf32>, vector<64x16xf32>, vector<16x16xf32> -> vector<16x16xf32>
    %c64_34 = arith.constant 64 : index
    %c0_35 = arith.constant 0 : index
    %39 = vector.load %arg9[%c64_34, %c0_35] : memref<96x16xf32, #tpu.memory_space<vmem>>, vector<16x16xf32>
    tpu.vector_store %arg9[%c64_34, %c0_35], %38 {strides = array<i32>} : memref<96x16xf32, #tpu.memory_space<vmem>>, vector<16x16xf32>,
    %40 = vector.extract_strided_slice %24 {offsets = [320, 0], sizes = [64, 16], strides = [1, 1]} : vector<384x16xf32> to vector<64x16xf32>
    %cst_36 = arith.constant dense<0.000000e+00> : vector<16x16xf32>
    %41 = tpu.matmul %23, %40, %cst_36 {dimension_numbers = #tpu.dot_dimension_numbers<[1], [0], [0], [1], [0, 0, 1, 1], [], []>} : vector<16x64xf32>, vector<64x16xf32>, vector<16x16xf32> -> vector<16x16xf32>
    %c80 = arith.constant 80 : index
    %c0_37 = arith.constant 0 : index
    %42 = vector.load %arg9[%c80, %c0_37] : memref<96x16xf32, #tpu.memory_space<vmem>>, vector<16x16xf32>
    tpu.vector_store %arg9[%c80, %c0_37], %41 {strides = array<i32>} : memref<96x16xf32, #tpu.memory_space<vmem>>, vector<16x16xf32>,
    %c0_38 = arith.constant 0 : index
    %c0_39 = arith.constant 0 : index
    %43 = vector.load %arg6[%c0_38, %c0_39] : memref<64x8xf32, #tpu.memory_space<vmem>>, vector<64x8xf32>
    %c0_40 = arith.constant 0 : index
    %c0_41 = arith.constant 0 : index
    %44 = vector.load %arg7[%c0_40, %c0_41] : memref<8x64xf32, #tpu.memory_space<vmem>>, vector<8x64xf32>
    %cst_42 = arith.constant dense<0.000000e+00> : vector<384x8xf32>
    %45 = tpu.matmul %0, %43, %cst_42 {dimension_numbers = #tpu.dot_dimension_numbers<[1], [0], [0], [1], [0, 0, 1, 1], [], []>} : vector<384x64xf32>, vector<64x8xf32>, vector<384x8xf32> -> vector<384x8xf32>
    %46 = vector.extract_strided_slice %45 {offsets = [0, 0], sizes = [64, 8], strides = [1, 1]} : vector<384x8xf32> to vector<64x8xf32>
    %cst_43 = arith.constant dense<0.000000e+00> : vector<8x8xf32>
    %47 = tpu.matmul %44, %46, %cst_43 {dimension_numbers = #tpu.dot_dimension_numbers<[1], [0], [0], [1], [0, 0, 1, 1], [], []>} : vector<8x64xf32>, vector<64x8xf32>, vector<8x8xf32> -> vector<8x8xf32>
    %c0_44 = arith.constant 0 : index
    %c0_45 = arith.constant 0 : index
    %48 = vector.load %arg10[%c0_44, %c0_45] : memref<48x8xf32, #tpu.memory_space<vmem>>, vector<8x8xf32>
    tpu.vector_store %arg10[%c0_44, %c0_45], %47 {strides = array<i32>} : memref<48x8xf32, #tpu.memory_space<vmem>>, vector<8x8xf32>,
    %49 = vector.extract_strided_slice %45 {offsets = [64, 0], sizes = [64, 8], strides = [1, 1]} : vector<384x8xf32> to vector<64x8xf32>
    %cst_46 = arith.constant dense<0.000000e+00> : vector<8x8xf32>
    %50 = tpu.matmul %44, %49, %cst_46 {dimension_numbers = #tpu.dot_dimension_numbers<[1], [0], [0], [1], [0, 0, 1, 1], [], []>} : vector<8x64xf32>, vector<64x8xf32>, vector<8x8xf32> -> vector<8x8xf32>
    %c8 = arith.constant 8 : index
    %c0_47 = arith.constant 0 : index
    %51 = vector.load %arg10[%c8, %c0_47] : memref<48x8xf32, #tpu.memory_space<vmem>>, vector<8x8xf32>
    tpu.vector_store %arg10[%c8, %c0_47], %50 {strides = array<i32>} : memref<48x8xf32, #tpu.memory_space<vmem>>, vector<8x8xf32>,
    %52 = vector.extract_strided_slice %45 {offsets = [128, 0], sizes = [64, 8], strides = [1, 1]} : vector<384x8xf32> to vector<64x8xf32>
    %cst_48 = arith.constant dense<0.000000e+00> : vector<8x8xf32>
    %53 = tpu.matmul %44, %52, %cst_48 {dimension_numbers = #tpu.dot_dimension_numbers<[1], [0], [0], [1], [0, 0, 1, 1], [], []>} : vector<8x64xf32>, vector<64x8xf32>, vector<8x8xf32> -> vector<8x8xf32>
    %c16_49 = arith.constant 16 : index
    %c0_50 = arith.constant 0 : index
    %54 = vector.load %arg10[%c16_49, %c0_50] : memref<48x8xf32, #tpu.memory_space<vmem>>, vector<8x8xf32>
    tpu.vector_store %arg10[%c16_49, %c0_50], %53 {strides = array<i32>} : memref<48x8xf32, #tpu.memory_space<vmem>>, vector<8x8xf32>,
    %55 = vector.extract_strided_slice %45 {offsets = [192, 0], sizes = [64, 8], strides = [1, 1]} : vector<384x8xf32> to vector<64x8xf32>
    %cst_51 = arith.constant dense<0.000000e+00> : vector<8x8xf32>
    %56 = tpu.matmul %44, %55, %cst_51 {dimension_numbers = #tpu.dot_dimension_numbers<[1], [0], [0], [1], [0, 0, 1, 1], [], []>} : vector<8x64xf32>, vector<64x8xf32>, vector<8x8xf32> -> vector<8x8xf32>
    %c24 = arith.constant 24 : index
    %c0_52 = arith.constant 0 : index
    %57 = vector.load %arg10[%c24, %c0_52] : memref<48x8xf32, #tpu.memory_space<vmem>>, vector<8x8xf32>
    tpu.vector_store %arg10[%c24, %c0_52], %56 {strides = array<i32>} : memref<48x8xf32, #tpu.memory_space<vmem>>, vector<8x8xf32>,
    %58 = vector.extract_strided_slice %45 {offsets = [256, 0], sizes = [64, 8], strides = [1, 1]} : vector<384x8xf32> to vector<64x8xf32>
    %cst_53 = arith.constant dense<0.000000e+00> : vector<8x8xf32>
    %59 = tpu.matmul %44, %58, %cst_53 {dimension_numbers = #tpu.dot_dimension_numbers<[1], [0], [0], [1], [0, 0, 1, 1], [], []>} : vector<8x64xf32>, vector<64x8xf32>, vector<8x8xf32> -> vector<8x8xf32>
    %c32_54 = arith.constant 32 : index
    %c0_55 = arith.constant 0 : index
    %60 = vector.load %arg10[%c32_54, %c0_55] : memref<48x8xf32, #tpu.memory_space<vmem>>, vector<8x8xf32>
    tpu.vector_store %arg10[%c32_54, %c0_55], %59 {strides = array<i32>} : memref<48x8xf32, #tpu.memory_space<vmem>>, vector<8x8xf32>,
    %61 = vector.extract_strided_slice %45 {offsets = [320, 0], sizes = [64, 8], strides = [1, 1]} : vector<384x8xf32> to vector<64x8xf32>
    %cst_56 = arith.constant dense<0.000000e+00> : vector<8x8xf32>
    %62 = tpu.matmul %44, %61, %cst_56 {dimension_numbers = #tpu.dot_dimension_numbers<[1], [0], [0], [1], [0, 0, 1, 1], [], []>} : vector<8x64xf32>, vector<64x8xf32>, vector<8x8xf32> -> vector<8x8xf32>
    %c40 = arith.constant 40 : index
    %c0_57 = arith.constant 0 : index
    %63 = vector.load %arg10[%c40, %c0_57] : memref<48x8xf32, #tpu.memory_space<vmem>>, vector<8x8xf32>
    tpu.vector_store %arg10[%c40, %c0_57], %62 {strides = array<i32>} : memref<48x8xf32, #tpu.memory_space<vmem>>, vector<8x8xf32>,
    return
  }
  func.func @transform_0(%arg0: i32) -> (i32, i32) {
    %c0_i32 = arith.constant 0 : i32
    %c0_i32_0 = arith.constant 0 : i32
    return %arg0, %c0_i32 : i32, i32
  }
  func.func @transform_1(%arg0: i32) -> (i32, i32) {
    %c0_i32 = arith.constant 0 : i32
    %c0_i32_0 = arith.constant 0 : i32
    %c0_i32_1 = arith.constant 0 : i32
    return %c0_i32, %c0_i32_0 : i32, i32
  }
  func.func @transform_2(%arg0: i32) -> (i32, i32) {
    %c0_i32 = arith.constant 0 : i32
    %c0_i32_0 = arith.constant 0 : i32
    %c0_i32_1 = arith.constant 0 : i32
    return %c0_i32, %c0_i32_0 : i32, i32
  }
  func.func @transform_3(%arg0: i32) -> (i32, i32) {
    %c0_i32 = arith.constant 0 : i32
    %c0_i32_0 = arith.constant 0 : i32
    %c0_i32_1 = arith.constant 0 : i32
    return %c0_i32, %c0_i32_0 : i32, i32
  }
  func.func @transform_4(%arg0: i32) -> (i32, i32) {
    %c0_i32 = arith.constant 0 : i32
    %c0_i32_0 = arith.constant 0 : i32
    %c0_i32_1 = arith.constant 0 : i32
    return %c0_i32, %c0_i32_0 : i32, i32
  }
  func.func @transform_5(%arg0: i32) -> (i32, i32) {
    %c0_i32 = arith.constant 0 : i32
    %c0_i32_0 = arith.constant 0 : i32
    %c0_i32_1 = arith.constant 0 : i32
    return %c0_i32, %c0_i32_0 : i32, i32
  }
  func.func @transform_6(%arg0: i32) -> (i32, i32) {
    %c0_i32 = arith.constant 0 : i32
    %c0_i32_0 = arith.constant 0 : i32
    %c0_i32_1 = arith.constant 0 : i32
    return %c0_i32, %c0_i32_0 : i32, i32
  }
  func.func @transform_7(%arg0: i32) -> (i32, i32) {
    %c0_i32 = arith.constant 0 : i32
    %c0_i32_0 = arith.constant 0 : i32
    return %arg0, %c0_i32 : i32, i32
  }
  func.func @transform_8(%arg0: i32) -> (i32, i32) {
    %c0_i32 = arith.constant 0 : i32
    %c0_i32_0 = arith.constant 0 : i32
    return %arg0, %c0_i32 : i32, i32
  }
  func.func @transform_9(%arg0: i32) -> (i32, i32) {
    %c0_i32 = arith.constant 0 : i32
    %c0_i32_0 = arith.constant 0 : i32
    return %arg0, %c0_i32 : i32, i32
  }
}

</mosaic_0001>

<bundles_post_ra>
// kernel: tpu_custom_call.1
= control target key start
LH: loop header
LB: loop body
LE: loop exit
PB: predicated region body
PF: predicated region fallthrough
CT: control target
= control target key end

     0   :  { %vm89_vm0 = vcmask 523264   ;;  %vm4106_vm1 = vmmov 0   ;;  %vm636_vm2 = vcmask 261120   ;;  %vm1482_vm3 = vcmask 130048   ;;  %s5085_s1 = inlined_call_operand.vmem [shape: f32[64,32], index: 1, kind: input, shape index: {}]   ;;  %s5086_s0 = inlined_call_operand.vmem [shape: f32[384,64], index: 0, kind: input, shape index: {}]   ;;  %s5087_s3 = inlined_call_operand.vmem [shape: f32[64,16], index: 3, kind: input, shape index: {}]   ;;  %s5088_s5 = inlined_call_operand.vmem [shape: f32[64,8], index: 5, kind: input, shape index: {}]   ;;  %s5089_s2 = inlined_call_operand.vmem [shape: f32[32,64], index: 2, kind: input, shape index: {}]   ;;  %s5090_s4 = inlined_call_operand.vmem [shape: f32[16,64], index: 4, kind: input, shape index: {}]   ;;  %s5091_s6 = inlined_call_operand.vmem [shape: f32[8,64], index: 6, kind: input, shape index: {}]   ;;  %s5092_s7 = inlined_call_operand.vmem [shape: f32[192,32], index: 7, kind: output, shape index: {0}]   ;;  %s5093_s8 = inlined_call_operand.vmem [shape: f32[96,16], index: 8, kind: output, shape index: {1}]   ;;  %s5094_s9 = inlined_call_operand.vmem [shape: f32[48,8], index: 9, kind: output, shape index: {2}]  }
   0x1   :  { %v77_v0 = vld [vmem:[%s5085_s1] sm:$0xff]  ;;  %v78_v1 = vld [vmem:[%s5085_s1 + $0x8] sm:$0xff]  ;;  %v79_v2 = vld [vmem:[%s5085_s1 + $0x10] sm:$0xff]  ;;  %vm2257_vm4 = vcmask 64512  }
   0x2   :  { %v3790_v3 = vpack.c.bf16 %v78_v1, %v77_v0  ;;  %v80_v4 = vld [vmem:[%s5085_s1 + $0x18] sm:$0xff]  ;;  %v81_v6 = vld [vmem:[%s5085_s1 + $0x20] sm:$0xff]  ;;  %v82_v7 = vld [vmem:[%s5085_s1 + $0x28] sm:$0xff] }
   0x3   :  { %v3794_v5 = vpack.c.bf16 %v80_v4, %v79_v2  ;;  %v4179_v8 = vld [vmem:[%s5086_s0] sm:$0xff]  ;;  %v3798_v9 = vpack.c.bf16 %v82_v7, %v81_v6  ;;  %v83_v10 = vld [vmem:[%s5085_s1 + $0x30] sm:$0xff]  ;;  %v84_v11 = vld [vmem:[%s5085_s1 + $0x38] sm:$0xff] }
   0x4   :  { %3791 = vmatprep.subr.bf16.mxu0 %v3790_v3  ;;  %3182 = vmatprep.mubr.msk.f32.mxu0 %vm89_vm0, %v4179_v8  ;;  %v3802_v12 = vpack.c.bf16 %v84_v11, %v83_v10  ;;  %v1086_v13 = vld [vmem:[%s5087_s3] sm:$0xff]  ;;  %v1087_v14 = vld [vmem:[%s5087_s3 + $0x8] sm:$0xff]  ;;  %v1088_v16 = vld [vmem:[%s5087_s3 + $0x10] sm:$0xff] }
   0x5   :  { %3793 = vmatpush3.bf16.msra.mxu0 %v3790_v3  ;;  %v3902_v15 = vpack.c.bf16 %v1087_v14, %v1086_v13  ;;  %v1089_v17 = vld [vmem:[%s5087_s3 + $0x18] sm:$0xff]  ;;  %v4204_v18 = vld [vmem:[%s5086_s0 + $0x8] sm:$0xff]  ;;  %v4209_v19 = vld [vmem:[%s5086_s0 + $0x10] sm:$0xff] }
   0x6   :  { %3795 = vmatprep.subr.bf16.mxu0 %v3794_v5  ;;  %v3906_v20 = vpack.c.bf16 %v1089_v17, %v1088_v16  ;;  %v1090_v21 = vld [vmem:[%s5087_s3 + $0x20] sm:$0xff]  ;;  %v1091_v22 = vld [vmem:[%s5087_s3 + $0x28] sm:$0xff]  ;;  %v4224_v23 = vld [vmem:[%s5086_s0 + $0x18] sm:$0xff] }
   0x7   :  { %v4229_v24 = vld [vmem:[%s5086_s0 + $0x20] sm:$0xff]  ;;  %v3910_v25 = vpack.c.bf16 %v1091_v22, %v1090_v21  ;;  %v1092_v26 = vld [vmem:[%s5087_s3 + $0x30] sm:$0xff]  ;;  %v1093_v27 = vld [vmem:[%s5087_s3 + $0x38] sm:$0xff] }
   0x8   :  { %v4244_v28 = vld [vmem:[%s5086_s0 + $0x28] sm:$0xff]  ;;  %v4249_v29 = vld [vmem:[%s5086_s0 + $0x30] sm:$0xff]  ;;  %v3914_v30 = vpack.c.bf16 %v1093_v27, %v1092_v26  ;;  %v1870_v31 = vld [vmem:[%s5088_s5] sm:$0xff] }
   0x9   :  { %3797 = vmatpush3.bf16.msra.mxu0 %v3794_v5  ;;  %v1871_v32 = vld [vmem:[%s5088_s5 + $0x8] sm:$0xff]  ;;  %v4264_v33 = vld [vmem:[%s5086_s0 + $0x38] sm:$0xff]  ;;  %v4269_v34 = vld [vmem:[%s5086_s0 + $0x40] sm:$0xff] }
   0xa   :  { %3799 = vmatprep.subr.bf16.mxu0 %v3798_v9  ;;  %v4271_v35 = vpack.c.bf16 %v1871_v32, %v1870_v31  ;;  %v4280_v36 = vld [vmem:[%s5086_s0 + $0x48] sm:$0xff]  ;;  %v4285_v37 = vld [vmem:[%s5086_s0 + $0x50] sm:$0xff]  ;;  %v4295_v38 = vld [vmem:[%s5086_s0 + $0x58] sm:$0xff] }
   0xb   :  { %v4300_v39 = vld [vmem:[%s5086_s0 + $0x60] sm:$0xff]  ;;  %v4309_v40 = vld [vmem:[%s5086_s0 + $0x68] sm:$0xff]  ;;  %v4314_v41 = vld [vmem:[%s5086_s0 + $0x70] sm:$0xff] }
   0xc   :  { %v4323_v42 = vld [vmem:[%s5086_s0 + $0x78] sm:$0xff]  ;;  %v4328_v43 = vld [vmem:[%s5086_s0 + $0x80] sm:$0xff]  ;;  %v4337_v44 = vld [vmem:[%s5086_s0 + $0x88] sm:$0xff] }
   0xd   :  { %3801 = vmatpush3.bf16.msra.mxu0 %v3798_v9  ;;  %v4342_v45 = vld [vmem:[%s5086_s0 + $0x90] sm:$0xff]  ;;  %v4351_v46 = vld [vmem:[%s5086_s0 + $0x98] sm:$0xff]  ;;  %v4356_v47 = vld [vmem:[%s5086_s0 + $0xa0] sm:$0xff] }
   0xe   :  { %3803 = vmatprep.subr.bf16.mxu0 %v3802_v12  ;;  %v4365_v48 = vld [vmem:[%s5086_s0 + $0xa8] sm:$0xff]  ;;  %v4370_v49 = vld [vmem:[%s5086_s0 + $0xb0] sm:$0xff]  ;;  %v4379_v50 = vld [vmem:[%s5086_s0 + $0xb8] sm:$0xff] }
   0xf   :  { %v4384_v51 = vld [vmem:[%s5086_s0 + $0xc0] sm:$0xff]  ;;  %v4393_v52 = vld [vmem:[%s5086_s0 + $0xc8] sm:$0xff]  ;;  %v4398_v53 = vld [vmem:[%s5086_s0 + $0xd0] sm:$0xff] }
  0x10   :  { %v4407_v54 = vld [vmem:[%s5086_s0 + $0xd8] sm:$0xff]  ;;  %v4412_v55 = vld [vmem:[%s5086_s0 + $0xe0] sm:$0xff]  ;;  %v4421_v56 = vld [vmem:[%s5086_s0 + $0xe8] sm:$0xff] }
  0x11   :  { %3805 = vmatpush3.bf16.msra.mxu0 %v3802_v12  ;;  %v4426_v57 = vld [vmem:[%s5086_s0 + $0xf0] sm:$0xff]  ;;  %v4435_v58 = vld [vmem:[%s5086_s0 + $0xf8] sm:$0xff]  ;;  %v4440_v59 = vld [vmem:[%s5086_s0 + $0x100] sm:$0xff] }
  0x12   :  { %3903 = vmatprep.subr.bf16.mxu0 %v3902_v15  ;;  %v4449_v60 = vld [vmem:[%s5086_s0 + $0x108] sm:$0xff]  ;;  %v4454_v61 = vld [vmem:[%s5086_s0 + $0x110] sm:$0xff]  ;;  %v4463_v62 = vld [vmem:[%s5086_s0 + $0x118] sm:$0xff] }
  0x13   :  { %v4468_v63 = vld [vmem:[%s5086_s0 + $0x120] sm:$0xff]  ;;  %v4477_v0 = vld [vmem:[%s5086_s0 + $0x128] sm:$0xff]  ;;  %v4482_v1 = vld [vmem:[%s5086_s0 + $0x130] sm:$0xff] }
  0x14   :  { %3183 = vmatmul.mubr.msk.f32.vlgmr.msra.gmra.mrb[0].mxu0 %vm89_vm0, %v4204_v18  ;;  %v4491_v2 = vld [vmem:[%s5086_s0 + $0x138] sm:$0xff]  ;;  %v4496_v3 = vld [vmem:[%s5086_s0 + $0x140] sm:$0xff]  ;;  %v4505_v4 = vld [vmem:[%s5086_s0 + $0x148] sm:$0xff] }
  0x15   :  { %3905 = vmatpush3.bf16.msra.mxu0 %v3902_v15  ;;  %3185 = vmatprep.mubr.msk.f32.mxu0 %vm89_vm0, %v4209_v19  ;;  %v4510_v5 = vld [vmem:[%s5086_s0 + $0x150] sm:$0xff]  ;;  %v4519_v6 = vld [vmem:[%s5086_s0 + $0x158] sm:$0xff]  ;;  %v4524_v7 = vld [vmem:[%s5086_s0 + $0x160] sm:$0xff] }
  0x16   :  { %3907 = vmatprep.subr.bf16.mxu0 %v3906_v20  ;;  %v4533_v9 = vld [vmem:[%s5086_s0 + $0x168] sm:$0xff]  ;;  %v4538_v10 = vld [vmem:[%s5086_s0 + $0x170] sm:$0xff]  ;;  %v4547_v11 = vld [vmem:[%s5086_s0 + $0x178] sm:$0xff] }
  0x17   :  { %v1872_v12 = vld [vmem:[%s5088_s5 + $0x10] sm:$0xff]  ;;  %v1873_v13 = vld [vmem:[%s5088_s5 + $0x18] sm:$0xff]  ;;  %v1874_v15 = vld [vmem:[%s5088_s5 + $0x20] sm:$0xff] }
  0x18   :  { %3186 = vmatmul.mubr.msk.f32.gmra.mrb[2].mxu0 %vm89_vm0, %v4224_v23  ;;  %v4018_v14 = vpack.c.bf16 %v1873_v13, %v1872_v12  ;;  %v1875_v16 = vld [vmem:[%s5088_s5 + $0x28] sm:$0xff]  ;;  %v1877_v21 = vld [vmem:[%s5088_s5 + $0x38] sm:$0xff]  ;;  %v4583_v22 = vld [vmem:[%s5089_s2] sm:$0xff] }
  0x19   :  { %3188 = vmatprep.mubr.msk.f32.mxu0 %vm89_vm0, %v4229_v24  ;;  %3909 = vmatpush3.bf16.msra.mxu0 %v3906_v20  ;;  %v4022_v17 = vpack.c.bf16 %v1875_v16, %v1874_v15  ;;  %v1876_v20 = vld [vmem:[%s5088_s5 + $0x30] sm:$0xff] }
  0x1a   :  { %3911 = vmatprep.subr.bf16.mxu0 %v3910_v25  ;;  %3270 = vmatprep.mubr.msk.f32.mxu1 %vm89_vm0, %v4583_v22 }
  0x1c   :  { %3189 = vmatmul.mubr.msk.f32.gmra.mrb[4].mxu0 %vm89_vm0, %v4244_v28 }
  0x1d   :  { %3191 = vmatprep.mubr.msk.f32.mxu0 %vm89_vm0, %v4249_v29  ;;  %3913 = vmatpush3.bf16.msra.mxu0 %v3910_v25  ;;  %v4026_v25 = vpack.c.bf16 %v1877_v21, %v1876_v20 }
  0x1e   :  { %3915 = vmatprep.subr.bf16.mxu0 %v3914_v30 }
  0x20   :  { %3192 = vmatmul.mubr.msk.f32.gmra.mrb[6].mxu0 %vm89_vm0, %v4264_v33 }
  0x21   :  { %3194 = vmatprep.mubr.msk.f32.mxu0 %vm89_vm0, %v4269_v34  ;;  %3917 = vmatpush3.bf16.msra.mxu0 %v3914_v30 }
  0x22   :  { %4015 = vmatprep.subr.bf16.mxu0 %v4271_v35 }
  0x24   :  { %3195 = vmatmul.mubr.msk.f32.gmra.mrb[8].mxu0 %vm89_vm0, %v4280_v36 }
  0x25   :  { %3197 = vmatprep.mubr.msk.f32.mxu0 %vm89_vm0, %v4285_v37 }
  0x28   :  { %3198 = vmatmul.mubr.msk.f32.gmra.mrb[10].mxu0 %vm89_vm0, %v4295_v38 }
  0x29   :  { %3200 = vmatprep.mubr.msk.f32.mxu0 %vm89_vm0, %v4300_v39 }
  0x2c   :  { %3201 = vmatmul.mubr.msk.f32.gmra.mrb[12].mxu0 %vm89_vm0, %v4309_v40 }
  0x2d   :  { %3203 = vmatprep.mubr.msk.f32.mxu0 %vm89_vm0, %v4314_v41 }
  0x30   :  { %3204 = vmatmul.mubr.msk.f32.gmra.mrb[14].mxu0 %vm89_vm0, %v4323_v42 }
  0x31   :  { %3206 = vmatprep.mubr.msk.f32.mxu0 %vm89_vm0, %v4328_v43 }
  0x34   :  { %3207 = vmatmul.mubr.msk.f32.gmra.mrb[16].mxu0 %vm89_vm0, %v4337_v44 }
  0x35   :  { %3209 = vmatprep.mubr.msk.f32.mxu0 %vm89_vm0, %v4342_v45 }
  0x38   :  { %3210 = vmatmul.mubr.msk.f32.gmra.mrb[18].mxu0 %vm89_vm0, %v4351_v46 }
  0x39   :  { %3212 = vmatprep.mubr.msk.f32.mxu0 %vm89_vm0, %v4356_v47 }
  0x3c   :  { %3213 = vmatmul.mubr.msk.f32.gmra.mrb[20].mxu0 %vm89_vm0, %v4365_v48 }
  0x3d   :  { %3215 = vmatprep.mubr.msk.f32.mxu0 %vm89_vm0, %v4370_v49 }
  0x40   :  { %3216 = vmatmul.mubr.msk.f32.gmra.mrb[22].mxu0 %vm89_vm0, %v4379_v50 }
  0x41   :  { %3218 = vmatprep.mubr.msk.f32.mxu0 %vm89_vm0, %v4384_v51 }
  0x44   :  { %3219 = vmatmul.mubr.msk.f32.gmra.mrb[24].mxu0 %vm89_vm0, %v4393_v52 }
  0x45   :  { %3221 = vmatprep.mubr.msk.f32.mxu0 %vm89_vm0, %v4398_v53 }
  0x48   :  { %3222 = vmatmul.mubr.msk.f32.gmra.mrb[26].mxu0 %vm89_vm0, %v4407_v54 }
  0x49   :  { %3224 = vmatprep.mubr.msk.f32.mxu0 %vm89_vm0, %v4412_v55 }
  0x4c   :  { %3225 = vmatmul.mubr.msk.f32.gmra.mrb[28].mxu0 %vm89_vm0, %v4421_v56 }
  0x4d   :  { %3227 = vmatprep.mubr.msk.f32.mxu0 %vm89_vm0, %v4426_v57 }
  0x50   :  { %3228 = vmatmul.mubr.msk.f32.gmra.mrb[30].mxu0 %vm89_vm0, %v4435_v58 }
  0x51   :  { %3230 = vmatprep.mubr.msk.f32.mxu0 %vm89_vm0, %v4440_v59 }
  0x54   :  { %3231 = vmatmul.mubr.msk.f32.gmra.mrb[32].mxu0 %vm89_vm0, %v4449_v60 }
  0x55   :  { %3233 = vmatprep.mubr.msk.f32.mxu0 %vm89_vm0, %v4454_v61 }
  0x58   :  { %3234 = vmatmul.mubr.msk.f32.gmra.mrb[34].mxu0 %vm89_vm0, %v4463_v62 }
  0x59   :  { %3236 = vmatprep.mubr.msk.f32.mxu0 %vm89_vm0, %v4468_v63 }
  0x5c   :  { %3237 = vmatmul.mubr.msk.f32.gmra.mrb[36].mxu0 %vm89_vm0, %v4477_v0 }
  0x5d   :  { %3239 = vmatprep.mubr.msk.f32.mxu0 %vm89_vm0, %v4482_v1 }
  0x60   :  { %3240 = vmatmul.mubr.msk.f32.gmra.mrb[38].mxu0 %vm89_vm0, %v4491_v2 }
  0x61   :  { %3242 = vmatprep.mubr.msk.f32.mxu0 %vm89_vm0, %v4496_v3 }
  0x64   :  { %3243 = vmatmul.mubr.msk.f32.gmra.mrb[40].mxu0 %vm89_vm0, %v4505_v4 }
  0x65   :  { %3245 = vmatprep.mubr.msk.f32.mxu0 %vm89_vm0, %v4510_v5 }
  0x68   :  { %3246 = vmatmul.mubr.msk.f32.gmra.mrb[42].mxu0 %vm89_vm0, %v4519_v6 }
  0x69   :  { %3248 = vmatprep.mubr.msk.f32.mxu0 %vm89_vm0, %v4524_v7 }
  0x6c   :  { %3249 = vmatmul.mubr.msk.f32.gmra.mrb[44].mxu0 %vm89_vm0, %v4533_v9 }
  0x6d   :  { %3251 = vmatprep.mubr.msk.f32.mxu0 %vm89_vm0, %v4538_v10 }
  0x70   :  { %3252 = vmatmul.mubr.msk.f32.gmra.mrb[46].mxu0 %vm89_vm0, %v4547_v11 }
  0x71   :  { %3402 = vmatprep.mubr.msk.f32.mxu0 %vm89_vm0, %v4179_v8 }
  0x74   :  { %3403 = vmatmul.mubr.msk.f32.vlgmr.msra.gmra.mrb[48].mxu0 %vm89_vm0, %v4204_v18 }
  0x75   :  { %4017 = vmatpush3.bf16.msra.mxu0 %v4271_v35  ;;  %3405 = vmatprep.mubr.msk.f32.mxu0 %vm89_vm0, %v4209_v19  ;;  %v4716_v35 = vld [vmem:[%s5089_s2 + $0x8] sm:$0xff] }
  0x76   :  { %4019 = vmatprep.subr.bf16.mxu0 %v4018_v14 }
  0x78   :  { %3406 = vmatmul.mubr.msk.f32.gmra.mrb[50].mxu0 %vm89_vm0, %v4224_v23 }
  0x79   :  { %3408 = vmatprep.mubr.msk.f32.mxu0 %vm89_vm0, %v4229_v24  ;;  %4021 = vmatpush3.bf16.msra.mxu0 %v4018_v14 }
  0x7a   :  { %4023 = vmatprep.subr.bf16.mxu0 %v4022_v17 }
  0x7c   :  { %3409 = vmatmul.mubr.msk.f32.gmra.mrb[52].mxu0 %vm89_vm0, %v4244_v28 }
  0x7d   :  { %3411 = vmatprep.mubr.msk.f32.mxu0 %vm89_vm0, %v4249_v29  ;;  %4025 = vmatpush3.bf16.msra.mxu0 %v4022_v17 }
  0x7e   :  { %4027 = vmatprep.subr.bf16.mxu0 %v4026_v25 }
  0x80   :  { %3412 = vmatmul.mubr.msk.f32.gmra.mrb[54].mxu0 %vm89_vm0, %v4264_v33 }
  0x81   :  { %3414 = vmatprep.mubr.msk.f32.mxu0 %vm89_vm0, %v4269_v34  ;;  %4029 = vmatpush3.bf16.msra.mxu0 %v4026_v25 }
  0x84   :  { %3415 = vmatmul.mubr.msk.f32.gmra.mrb[56].mxu0 %vm89_vm0, %v4280_v36 }
  0x85   :  { %3417 = vmatprep.mubr.msk.f32.mxu0 %vm89_vm0, %v4285_v37 }
  0x88   :  { %3418 = vmatmul.mubr.msk.f32.gmra.mrb[58].mxu0 %vm89_vm0, %v4295_v38 }
  0x89   :  { %3420 = vmatprep.mubr.msk.f32.mxu0 %vm89_vm0, %v4300_v39 }
  0x8c   :  { %3421 = vmatmul.mubr.msk.f32.gmra.mrb[60].mxu0 %vm89_vm0, %v4309_v40 }
  0x8d   :  { %3423 = vmatprep.mubr.msk.f32.mxu0 %vm89_vm0, %v4314_v41 }
  0x90   :  { %3424 = vmatmul.mubr.msk.f32.gmra.mrb[62].mxu0 %vm89_vm0, %v4323_v42 }
  0x91   :  { %3426 = vmatprep.mubr.msk.f32.mxu0 %vm89_vm0, %v4328_v43 }
  0x94   :  { %3427 = vmatmul.mubr.msk.f32.gmra.mrb[64].mxu0 %vm89_vm0, %v4337_v44 }
  0x95   :  { %3429 = vmatprep.mubr.msk.f32.mxu0 %vm89_vm0, %v4342_v45 }
  0x98   :  { %3430 = vmatmul.mubr.msk.f32.gmra.mrb[66].mxu0 %vm89_vm0, %v4351_v46 }
  0x99   :  { %3432 = vmatprep.mubr.msk.f32.mxu0 %vm89_vm0, %v4356_v47 }
  0x9c   :  { %3433 = vmatmul.mubr.msk.f32.gmra.mrb[68].mxu0 %vm89_vm0, %v4365_v48 }
  0x9d   :  { %3435 = vmatprep.mubr.msk.f32.mxu0 %vm89_vm0, %v4370_v49 }
  0xa0   :  { %3436 = vmatmul.mubr.msk.f32.gmra.mrb[70].mxu0 %vm89_vm0, %v4379_v50 }
  0xa1   :  { %3438 = vmatprep.mubr.msk.f32.mxu0 %vm89_vm0, %v4384_v51 }
  0xa4   :  { %3439 = vmatmul.mubr.msk.f32.gmra.mrb[72].mxu0 %vm89_vm0, %v4393_v52 }
  0xa5   :  { %3441 = vmatprep.mubr.msk.f32.mxu0 %vm89_vm0, %v4398_v53 }
  0xa8   :  { %3442 = vmatmul.mubr.msk.f32.gmra.mrb[74].mxu0 %vm89_vm0, %v4407_v54 }
  0xa9   :  { %3444 = vmatprep.mubr.msk.f32.mxu0 %vm89_vm0, %v4412_v55 }
  0xac   :  { %3445 = vmatmul.mubr.msk.f32.gmra.mrb[76].mxu0 %vm89_vm0, %v4421_v56 }
  0xad   :  { %3447 = vmatprep.mubr.msk.f32.mxu0 %vm89_vm0, %v4426_v57 }
  0xb0   :  { %3448 = vmatmul.mubr.msk.f32.gmra.mrb[78].mxu0 %vm89_vm0, %v4435_v58 }
  0xb1   :  { %3450 = vmatprep.mubr.msk.f32.mxu0 %vm89_vm0, %v4440_v59 }
  0xb4   :  { %3451 = vmatmul.mubr.msk.f32.gmra.mrb[80].mxu0 %vm89_vm0, %v4449_v60 }
  0xb5   :  { %3453 = vmatprep.mubr.msk.f32.mxu0 %vm89_vm0, %v4454_v61 }
  0xb8   :  { %3454 = vmatmul.mubr.msk.f32.gmra.mrb[82].mxu0 %vm89_vm0, %v4463_v62 }
  0xb9   :  { %3456 = vmatprep.mubr.msk.f32.mxu0 %vm89_vm0, %v4468_v63 }
  0xbc   :  { %3457 = vmatmul.mubr.msk.f32.gmra.mrb[84].mxu0 %vm89_vm0, %v4477_v0 }
  0xbd   :  { %3459 = vmatprep.mubr.msk.f32.mxu0 %vm89_vm0, %v4482_v1 }
  0xc0   :  { %3460 = vmatmul.mubr.msk.f32.gmra.mrb[86].mxu0 %vm89_vm0, %v4491_v2 }
  0xc1   :  { %3462 = vmatprep.mubr.msk.f32.mxu0 %vm89_vm0, %v4496_v3 }
  0xc4   :  { %3463 = vmatmul.mubr.msk.f32.gmra.mrb[88].mxu0 %vm89_vm0, %v4505_v4 }
  0xc5   :  { %3465 = vmatprep.mubr.msk.f32.mxu0 %vm89_vm0, %v4510_v5 }
  0xc8   :  { %3466 = vmatmul.mubr.msk.f32.gmra.mrb[90].mxu0 %vm89_vm0, %v4519_v6 }
  0xc9   :  { %3468 = vmatprep.mubr.msk.f32.mxu0 %vm89_vm0, %v4524_v7 }
  0xcc   :  { %3469 = vmatmul.mubr.msk.f32.gmra.mrb[92].mxu0 %vm89_vm0, %v4533_v9 }
  0xcd   :  { %3471 = vmatprep.mubr.msk.f32.mxu0 %vm89_vm0, %v4538_v10 }
  0xd0   :  { %3472 = vmatmul.mubr.msk.f32.gmra.mrb[94].mxu0 %vm89_vm0, %v4547_v11 }
  0xd1   :  { %3604 = vmatprep.mubr.msk.f32.mxu0 %vm89_vm0, %v4179_v8 }
  0xd4   :  { %3605 = vmatmul.mubr.msk.f32.vlgmr.msra.gmra.mrb[96].mxu0 %vm89_vm0, %v4204_v18 }
  0xd5   :  { %3607 = vmatprep.mubr.msk.f32.mxu0 %vm89_vm0, %v4209_v19 }
  0xd8   :  { %3608 = vmatmul.mubr.msk.f32.gmra.mrb[98].mxu0 %vm89_vm0, %v4224_v23 }
  0xd9   :  { %3610 = vmatprep.mubr.msk.f32.mxu0 %vm89_vm0, %v4229_v24 }
  0xdc   :  { %3611 = vmatmul.mubr.msk.f32.gmra.mrb[100].mxu0 %vm89_vm0, %v4244_v28 }
  0xdd   :  { %3613 = vmatprep.mubr.msk.f32.mxu0 %vm89_vm0, %v4249_v29 }
  0xe0   :  { %3614 = vmatmul.mubr.msk.f32.gmra.mrb[102].mxu0 %vm89_vm0, %v4264_v33 }
  0xe1   :  { %3616 = vmatprep.mubr.msk.f32.mxu0 %vm89_vm0, %v4269_v34 }
  0xe4   :  { %3617 = vmatmul.mubr.msk.f32.gmra.mrb[104].mxu0 %vm89_vm0, %v4280_v36 }
  0xe5   :  { %3619 = vmatprep.mubr.msk.f32.mxu0 %vm89_vm0, %v4285_v37  ;;  %v4723_v37 = vld [vmem:[%s5089_s2 + $0x10] sm:$0xff] }
  0xe7   :  { %v3184_v8 = vpop.f32.mrb[0].mxu0 }
  0xe8   :  { %v300_v18 = vpop.f32.mrb[1].mxu0  ;;  %3620 = vmatmul.mubr.msk.f32.gmra.mrb[106].mxu0 %vm89_vm0, %v4295_v38 }
  0xe9   :  { %v3806_v19 = vpack.c.bf16 %v3184_v8, %v300_v18  ;;  %3622 = vmatprep.mubr.msk.f32.mxu0 %vm89_vm0, %v4300_v39 }
  0xeb   :  { %v3187_v23 = vpop.f32.mrb[2].mxu0  ;;  %3807 = vmatprep.subr.bf16.mxu1 %v3806_v19 }
  0xec   :  { %v310_v24 = vpop.f32.mrb[3].mxu0  ;;  %3809 = vmatpush3.bf16.msra.mxu1 %v3806_v19  ;;  %3623 = vmatmul.mubr.msk.f32.gmra.mrb[108].mxu0 %vm89_vm0, %v4309_v40  ;;  %v4732_v40 = vld [vmem:[%s5089_s2 + $0x18] sm:$0xff] }
  0xed   :  { %v3810_v26 = vpack.c.bf16 %v3187_v23, %v310_v24  ;;  %3625 = vmatprep.mubr.msk.f32.mxu0 %vm89_vm0, %v4314_v41 }
  0xef   :  { %v3190_v27 = vpop.f32.mrb[4].mxu0  ;;  %3811 = vmatprep.subr.bf16.mxu1 %v3810_v26 }
  0xf0   :  { %v320_v28 = vpop.f32.mrb[5].mxu0  ;;  %3813 = vmatpush3.bf16.msra.mxu1 %v3810_v26  ;;  %3626 = vmatmul.mubr.msk.f32.gmra.mrb[110].mxu0 %vm89_vm0, %v4323_v42 }
  0xf1   :  { %v3814_v29 = vpack.c.bf16 %v3190_v27, %v320_v28  ;;  %3628 = vmatprep.mubr.msk.f32.mxu0 %vm89_vm0, %v4328_v43 }
  0xf3   :  { %v3193_v30 = vpop.f32.mrb[6].mxu0  ;;  %3815 = vmatprep.subr.bf16.mxu1 %v3814_v29 }
  0xf4   :  { %v330_v31 = vpop.f32.mrb[7].mxu0  ;;  %3817 = vmatpush3.bf16.msra.mxu1 %v3814_v29  ;;  %3629 = vmatmul.mubr.msk.f32.gmra.mrb[112].mxu0 %vm89_vm0, %v4337_v44 }
  0xf5   :  { %v3818_v32 = vpack.c.bf16 %v3193_v30, %v330_v31  ;;  %3631 = vmatprep.mubr.msk.f32.mxu0 %vm89_vm0, %v4342_v45 }
  0xf7   :  { %v3196_v33 = vpop.f32.mrb[8].mxu0  ;;  %3819 = vmatprep.subr.bf16.mxu1 %v3818_v32 }
  0xf8   :  { %v340_v34 = vpop.f32.mrb[9].mxu0  ;;  %3821 = vmatpush3.bf16.msra.mxu1 %v3818_v32  ;;  %3632 = vmatmul.mubr.msk.f32.gmra.mrb[114].mxu0 %vm89_vm0, %v4351_v46 }
  0xf9   :  { %v3822_v36 = vpack.c.bf16 %v3196_v33, %v340_v34  ;;  %3634 = vmatprep.mubr.msk.f32.mxu0 %vm89_vm0, %v4356_v47 }
  0xfb   :  { %v3199_v38 = vpop.f32.mrb[10].mxu0  ;;  %3823 = vmatprep.subr.bf16.mxu1 %v3822_v36  ;;  %3271 = vmatmul.mubr.msk.f32.vlgmr.msra.gmra.mrb[0].mxu1 %vm89_vm0, %v4716_v35 }
  0xfc   :  { %v350_v39 = vpop.f32.mrb[11].mxu0  ;;  %3825 = vmatpush3.bf16.msra.mxu1 %v3822_v36  ;;  %3635 = vmatmul.mubr.msk.f32.gmra.mrb[116].mxu0 %vm89_vm0, %v4365_v48 }
  0xfd   :  { %v3826_v41 = vpack.c.bf16 %v3199_v38, %v350_v39  ;;  %3637 = vmatprep.mubr.msk.f32.mxu0 %vm89_vm0, %v4370_v49  ;;  %3273 = vmatprep.mubr.msk.f32.mxu1 %vm89_vm0, %v4723_v37 }
  0xff   :  { %v3202_v42 = vpop.f32.mrb[12].mxu0  ;;  %3827 = vmatprep.subr.bf16.mxu1 %v3826_v41  ;;  %3274 = vmatmul.mubr.msk.f32.gmra.mrb[2].mxu1 %vm89_vm0, %v4732_v40 }
 0x100   :  { %v360_v43 = vpop.f32.mrb[13].mxu0  ;;  %3829 = vmatpush3.bf16.msra.mxu1 %v3826_v41  ;;  %3638 = vmatmul.mubr.msk.f32.gmra.mrb[118].mxu0 %vm89_vm0, %v4379_v50  ;;  %v4831_v41 = vld [vmem:[%s5090_s4] sm:$0xff] }
 0x101   :  { %v3830_v44 = vpack.c.bf16 %v3202_v42, %v360_v43  ;;  %3640 = vmatprep.mubr.msk.f32.mxu0 %vm89_vm0, %v4384_v51  ;;  %3292 = vmatprep.mubr.msk.f32.mxu1 %vm89_vm0, %v4583_v22 }
 0x103   :  { %v3205_v45 = vpop.f32.mrb[14].mxu0  ;;  %3831 = vmatprep.subr.bf16.mxu1 %v3830_v44 }
 0x104   :  { %v370_v46 = vpop.f32.mrb[15].mxu0  ;;  %3833 = vmatpush3.bf16.msra.mxu1 %v3830_v44  ;;  %3641 = vmatmul.mubr.msk.f32.gmra.mrb[120].mxu0 %vm89_vm0, %v4393_v52 }
 0x105   :  { %v3834_v47 = vpack.c.bf16 %v3205_v45, %v370_v46  ;;  %3643 = vmatprep.mubr.msk.f32.mxu0 %vm89_vm0, %v4398_v53 }
 0x107   :  { %v3208_v48 = vpop.f32.mrb[16].mxu0  ;;  %3835 = vmatprep.subr.bf16.mxu1 %v3834_v47 }
 0x108   :  { %v380_v49 = vpop.f32.mrb[17].mxu0  ;;  %3837 = vmatpush3.bf16.msra.mxu1 %v3834_v47  ;;  %3644 = vmatmul.mubr.msk.f32.gmra.mrb[122].mxu0 %vm89_vm0, %v4407_v54 }
 0x109   :  { %v3838_v50 = vpack.c.bf16 %v3208_v48, %v380_v49  ;;  %3646 = vmatprep.mubr.msk.f32.mxu0 %vm89_vm0, %v4412_v55  ;;  %v4840_v48 = vld [vmem:[%s5090_s4 + $0x8] sm:$0xff] }
 0x10b   :  { %v3211_v51 = vpop.f32.mrb[18].mxu0  ;;  %3839 = vmatprep.subr.bf16.mxu1 %v3838_v50  ;;  %3293 = vmatmul.mubr.msk.f32.vlgmr.msra.gmra.mrb[4].mxu1 %vm89_vm0, %v4716_v35 }
 0x10c   :  { %v390_v52 = vpop.f32.mrb[19].mxu0  ;;  %3841 = vmatpush3.bf16.msra.mxu1 %v3838_v50  ;;  %3647 = vmatmul.mubr.msk.f32.gmra.mrb[124].mxu0 %vm89_vm0, %v4421_v56 }
 0x10d   :  { %v3842_v53 = vpack.c.bf16 %v3211_v51, %v390_v52  ;;  %3649 = vmatprep.mubr.msk.f32.mxu0 %vm89_vm0, %v4426_v57  ;;  %3295 = vmatprep.mubr.msk.f32.mxu1 %vm89_vm0, %v4723_v37 }
 0x10f   :  { %v3214_v54 = vpop.f32.mrb[20].mxu0  ;;  %3843 = vmatprep.subr.bf16.mxu1 %v3842_v53  ;;  %3296 = vmatmul.mubr.msk.f32.gmra.mrb[6].mxu1 %vm89_vm0, %v4732_v40 }
 0x110   :  { %v400_v55 = vpop.f32.mrb[21].mxu0  ;;  %3845 = vmatpush3.bf16.msra.mxu1 %v3842_v53  ;;  %3650 = vmatmul.mubr.msk.f32.gmra.mrb[126].mxu0 %vm89_vm0, %v4435_v58 }
 0x111   :  { %v3846_v12 = vpack.c.bf16 %v3214_v54, %v400_v55  ;;  %3652 = vmatprep.mubr.msk.f32.mxu0 %vm89_vm0, %v4440_v59  ;;  %3314 = vmatprep.mubr.msk.f32.mxu1 %vm89_vm0, %v4583_v22 }
 0x113   :  { %v3217_v56 = vpop.f32.mrb[22].mxu0  ;;  %3847 = vmatprep.subr.bf16.mxu1 %v3846_v12 }
 0x114   :  { %v410_v57 = vpop.f32.mrb[23].mxu0  ;;  %3849 = vmatpush3.bf16.msra.mxu1 %v3846_v12  ;;  %3653 = vmatmul.mubr.msk.f32.gmra.mrb[128].mxu0 %vm89_vm0, %v4449_v60 }
 0x115   :  { %v3850_v13 = vpack.c.bf16 %v3217_v56, %v410_v57  ;;  %3655 = vmatprep.mubr.msk.f32.mxu0 %vm89_vm0, %v4454_v61 }
 0x117   :  { %v3220_v14 = vpop.f32.mrb[24].mxu0  ;;  %3851 = vmatprep.subr.bf16.mxu1 %v3850_v13 }
 0x118   :  { %v420_v58 = vpop.f32.mrb[25].mxu0  ;;  %3853 = vmatpush3.bf16.msra.mxu1 %v3850_v13  ;;  %3656 = vmatmul.mubr.msk.f32.gmra.mrb[130].mxu0 %vm89_vm0, %v4463_v62 }
 0x119   :  { %v3854_v59 = vpack.c.bf16 %v3220_v14, %v420_v58  ;;  %3658 = vmatprep.mubr.msk.f32.mxu0 %vm89_vm0, %v4468_v63 }
 0x11b   :  { %v3223_v15 = vpop.f32.mrb[26].mxu0  ;;  %3855 = vmatprep.subr.bf16.mxu1 %v3854_v59  ;;  %3315 = vmatmul.mubr.msk.f32.vlgmr.msra.gmra.mrb[8].mxu1 %vm89_vm0, %v4716_v35 }
 0x11c   :  { %v430_v60 = vpop.f32.mrb[27].mxu0  ;;  %3857 = vmatpush3.bf16.msra.mxu1 %v3854_v59  ;;  %3659 = vmatmul.mubr.msk.f32.gmra.mrb[132].mxu0 %vm89_vm0, %v4477_v0 }
 0x11d   :  { %v3858_v61 = vpack.c.bf16 %v3223_v15, %v430_v60  ;;  %3661 = vmatprep.mubr.msk.f32.mxu0 %vm89_vm0, %v4482_v1  ;;  %3317 = vmatprep.mubr.msk.f32.mxu1 %vm89_vm0, %v4723_v37 }
 0x11f   :  { %v3226_v62 = vpop.f32.mrb[28].mxu0  ;;  %3859 = vmatprep.subr.bf16.mxu1 %v3858_v61  ;;  %3318 = vmatmul.mubr.msk.f32.gmra.mrb[10].mxu1 %vm89_vm0, %v4732_v40 }
 0x120   :  { %v440_v63 = vpop.f32.mrb[29].mxu0  ;;  %3861 = vmatpush3.bf16.msra.mxu1 %v3858_v61  ;;  %3662 = vmatmul.mubr.msk.f32.gmra.mrb[134].mxu0 %vm89_vm0, %v4491_v2 }
 0x121   :  { %v3862_v16 = vpack.c.bf16 %v3226_v62, %v440_v63  ;;  %3664 = vmatprep.mubr.msk.f32.mxu0 %vm89_vm0, %v4496_v3  ;;  %3336 = vmatprep.mubr.msk.f32.mxu1 %vm89_vm0, %v4583_v22 }
 0x123   :  { %v3229_v0 = vpop.f32.mrb[30].mxu0  ;;  %3863 = vmatprep.subr.bf16.mxu1 %v3862_v16 }
 0x124   :  { %v450_v1 = vpop.f32.mrb[31].mxu0  ;;  %3865 = vmatpush3.bf16.msra.mxu1 %v3862_v16  ;;  %3665 = vmatmul.mubr.msk.f32.gmra.mrb[136].mxu0 %vm89_vm0, %v4505_v4 }
 0x125   :  { %v3866_v17 = vpack.c.bf16 %v3229_v0, %v450_v1  ;;  %3667 = vmatprep.mubr.msk.f32.mxu0 %vm89_vm0, %v4510_v5 }
 0x127   :  { %v3232_v20 = vpop.f32.mrb[32].mxu0  ;;  %3867 = vmatprep.subr.bf16.mxu1 %v3866_v17 }
 0x128   :  { %v460_v2 = vpop.f32.mrb[33].mxu0  ;;  %3869 = vmatpush3.bf16.msra.mxu1 %v3866_v17  ;;  %3668 = vmatmul.mubr.msk.f32.gmra.mrb[138].mxu0 %vm89_vm0, %v4519_v6 }
 0x129   :  { %v3870_v3 = vpack.c.bf16 %v3232_v20, %v460_v2  ;;  %3670 = vmatprep.mubr.msk.f32.mxu0 %vm89_vm0, %v4524_v7 }
 0x12b   :  { %v3235_v21 = vpop.f32.mrb[34].mxu0  ;;  %3871 = vmatprep.subr.bf16.mxu1 %v3870_v3  ;;  %3337 = vmatmul.mubr.msk.f32.vlgmr.msra.gmra.mrb[12].mxu1 %vm89_vm0, %v4716_v35 }
 0x12c   :  { %v470_v4 = vpop.f32.mrb[35].mxu0  ;;  %3873 = vmatpush3.bf16.msra.mxu1 %v3870_v3  ;;  %3671 = vmatmul.mubr.msk.f32.gmra.mrb[140].mxu0 %vm89_vm0, %v4533_v9 }
 0x12d   :  { %v3874_v5 = vpack.c.bf16 %v3235_v21, %v470_v4  ;;  %3673 = vmatprep.mubr.msk.f32.mxu0 %vm89_vm0, %v4538_v10  ;;  %3339 = vmatprep.mubr.msk.f32.mxu1 %vm89_vm0, %v4723_v37 }
 0x12f   :  { %v3238_v6 = vpop.f32.mrb[36].mxu0  ;;  %3875 = vmatprep.subr.bf16.mxu1 %v3874_v5  ;;  %3340 = vmatmul.mubr.msk.f32.gmra.mrb[14].mxu1 %vm89_vm0, %v4732_v40 }
 0x130   :  { %v480_v7 = vpop.f32.mrb[37].mxu0  ;;  %3877 = vmatpush3.bf16.msra.mxu1 %v3874_v5  ;;  %3674 = vmatmul.mubr.msk.f32.gmra.mrb[142].mxu0 %vm89_vm0, %v4547_v11 }
 0x131   :  { %v3878_v25 = vpack.c.bf16 %v3238_v6, %v480_v7  ;;  %3358 = vmatprep.mubr.msk.f32.mxu1 %vm89_vm0, %v4583_v22 }
 0x133   :  { %v3241_v9 = vpop.f32.mrb[38].mxu0  ;;  %3879 = vmatprep.subr.bf16.mxu1 %v3878_v25 }
 0x134   :  { %v490_v10 = vpop.f32.mrb[39].mxu0  ;;  %3881 = vmatpush3.bf16.msra.mxu1 %v3878_v25 }
 0x135   :  { %v3882_v8 = vpack.c.bf16 %v3241_v9, %v490_v10 }
 0x137   :  { %v3244_v18 = vpop.f32.mrb[40].mxu0  ;;  %3883 = vmatprep.subr.bf16.mxu1 %v3882_v8 }
 0x138   :  { %v500_v19 = vpop.f32.mrb[41].mxu0  ;;  %3885 = vmatpush3.bf16.msra.mxu1 %v3882_v8 }
 0x139   :  { %v3886_v23 = vpack.c.bf16 %v3244_v18, %v500_v19 }
 0x13b   :  { %v3247_v24 = vpop.f32.mrb[42].mxu0  ;;  %3887 = vmatprep.subr.bf16.mxu1 %v3886_v23  ;;  %3359 = vmatmul.mubr.msk.f32.vlgmr.msra.gmra.mrb[16].mxu1 %vm89_vm0, %v4716_v35 }
 0x13c   :  { %v510_v11 = vpop.f32.mrb[43].mxu0  ;;  %3889 = vmatpush3.bf16.msra.mxu1 %v3886_v23  ;;  %3361 = vmatprep.mubr.msk.f32.mxu1 %vm89_vm0, %v4723_v37 }
 0x13d   :  { %v3890_v26 = vpack.c.bf16 %v3247_v24, %v510_v11 }
 0x13f   :  { %v3250_v27 = vpop.f32.mrb[44].mxu0  ;;  %3891 = vmatprep.subr.bf16.mxu1 %v3890_v26  ;;  %3362 = vmatmul.mubr.msk.f32.gmra.mrb[18].mxu1 %vm89_vm0, %v4732_v40 }
 0x140   :  { %v520_v28 = vpop.f32.mrb[45].mxu0  ;;  %3893 = vmatpush3.bf16.msra.mxu1 %v3890_v26  ;;  %3380 = vmatprep.mubr.msk.f32.mxu1 %vm89_vm0, %v4583_v22 }
 0x141   :  { %v3894_v29 = vpack.c.bf16 %v3250_v27, %v520_v28 }
 0x143   :  { %v3253_v30 = vpop.f32.mrb[46].mxu0  ;;  %3895 = vmatprep.subr.bf16.mxu1 %v3894_v29 }
 0x144   :  { %v530_v31 = vpop.f32.mrb[47].mxu0  ;;  %3897 = vmatpush3.bf16.msra.mxu1 %v3894_v29 }
 0x145   :  { %v3898_v32 = vpack.c.bf16 %v3253_v30, %v530_v31 }
 0x147   :  { %3899 = vmatprep.subr.bf16.mxu1 %v3898_v32  ;;  %v3404_v33 = vpop.f32.mrb[48].mxu0 }
 0x148   :  { %3901 = vmatpush3.bf16.msra.mxu1 %v3898_v32  ;;  %v1162_v34 = vpop.f32.mrb[49].mxu0 }
 0x149   :  { %v3918_v36 = vpack.c.bf16 %v3404_v33, %v1162_v34 }
 0x14b   :  { %v3407_v38 = vpop.f32.mrb[50].mxu0  ;;  %3919 = vmatprep.subr.bf16.mxu1 %v3918_v36  ;;  %3381 = vmatmul.mubr.msk.f32.vlgmr.msra.gmra.mrb[20].mxu1 %vm89_vm0, %v4716_v35 }
 0x14c   :  { %v1172_v39 = vpop.f32.mrb[51].mxu0  ;;  %3921 = vmatpush3.bf16.msra.mxu1 %v3918_v36  ;;  %3383 = vmatprep.mubr.msk.f32.mxu1 %vm89_vm0, %v4723_v37 }
 0x14d   :  { %v3922_v22 = vpack.c.bf16 %v3407_v38, %v1172_v39 }
 0x14f   :  { %v3410_v42 = vpop.f32.mrb[52].mxu0  ;;  %3923 = vmatprep.subr.bf16.mxu1 %v3922_v22  ;;  %3384 = vmatmul.mubr.msk.f32.gmra.mrb[22].mxu1 %vm89_vm0, %v4732_v40 }
 0x150   :  { %v1182_v43 = vpop.f32.mrb[53].mxu0  ;;  %3925 = vmatpush3.bf16.msra.mxu1 %v3922_v22  ;;  %3490 = vmatprep.mubr.msk.f32.mxu1 %vm89_vm0, %v4831_v41 }
 0x151   :  { %v3926_v35 = vpack.c.bf16 %v3410_v42, %v1182_v43 }
 0x153   :  { %v3413_v44 = vpop.f32.mrb[54].mxu0  ;;  %3927 = vmatprep.subr.bf16.mxu1 %v3926_v35 }
 0x154   :  { %v1192_v37 = vpop.f32.mrb[55].mxu0  ;;  %3929 = vmatpush3.bf16.msra.mxu1 %v3926_v35 }
 0x155   :  { %v3930_v45 = vpack.c.bf16 %v3413_v44, %v1192_v37 }
 0x157   :  { %v3416_v46 = vpop.f32.mrb[56].mxu0  ;;  %3931 = vmatprep.subr.bf16.mxu1 %v3930_v45 }
 0x158   :  { %v1202_v47 = vpop.f32.mrb[57].mxu0  ;;  %3933 = vmatpush3.bf16.msra.mxu1 %v3930_v45 }
 0x159   :  { %v3934_v40 = vpack.c.bf16 %v3416_v46, %v1202_v47  ;;  %v4105_v47 = vmov 0.0|0.0  }
 0x15b   :  { %v3419_v49 = vpop.f32.mrb[58].mxu0  ;;  %3935 = vmatprep.subr.bf16.mxu1 %v3934_v40  ;;  %3491 = vmatmul.mubr.msk.f32.vlgmr.msra.gmra.mrb[24].mxu1 %vm89_vm0, %v4840_v48 }
 0x15c   :  { %v1212_v50 = vpop.f32.mrb[59].mxu0  ;;  %3937 = vmatpush3.bf16.msra.mxu1 %v3934_v40  ;;  %3509 = vmatprep.mubr.msk.f32.mxu1 %vm89_vm0, %v4831_v41 }
 0x15d   :  { %v3938_v51 = vpack.c.bf16 %v3419_v49, %v1212_v50  ;;  %v4107_v49 = vmov 0.0  }
 0x15f   :  { %v3422_v52 = vpop.f32.mrb[60].mxu0  ;;  %3939 = vmatprep.subr.bf16.mxu1 %v3938_v51 }
 0x160   :  { %v1222_v53 = vpop.f32.mrb[61].mxu0  ;;  %3941 = vmatpush3.bf16.msra.mxu1 %v3938_v51 }
 0x161   :  { %v3942_v54 = vpack.c.bf16 %v3422_v52, %v1222_v53 }
 0x163   :  { %v3425_v55 = vpop.f32.mrb[62].mxu0  ;;  %3943 = vmatprep.subr.bf16.mxu1 %v3942_v54 }
 0x164   :  { %v1232_v12 = vpop.f32.mrb[63].mxu0  ;;  %3945 = vmatpush3.bf16.msra.mxu1 %v3942_v54 }
 0x165   :  { %v3946_v56 = vpack.c.bf16 %v3425_v55, %v1232_v12 }
 0x167   :  { %v3428_v57 = vpop.f32.mrb[64].mxu0  ;;  %3947 = vmatprep.subr.bf16.mxu1 %v3946_v56 }
 0x168   :  { %v1242_v13 = vpop.f32.mrb[65].mxu0  ;;  %3949 = vmatpush3.bf16.msra.mxu1 %v3946_v56 }
 0x169   :  { %v3950_v14 = vpack.c.bf16 %v3428_v57, %v1242_v13  ;;  %v4873_v57 = vld [vmem:[%s5091_s6] sm:$0xff] }
 0x16b   :  { %v3431_v58 = vpop.f32.mrb[66].mxu0  ;;  %3951 = vmatprep.subr.bf16.mxu1 %v3950_v14  ;;  %3510 = vmatmul.mubr.msk.f32.vlgmr.msra.gmra.mrb[26].mxu1 %vm89_vm0, %v4840_v48 }
 0x16c   :  { %v1252_v59 = vpop.f32.mrb[67].mxu0  ;;  %3953 = vmatpush3.bf16.msra.mxu1 %v3950_v14  ;;  %3528 = vmatprep.mubr.msk.f32.mxu1 %vm89_vm0, %v4831_v41 }
 0x16d   :  { %v3954_v15 = vpack.c.bf16 %v3431_v58, %v1252_v59 }
 0x16f   :  { %v3434_v60 = vpop.f32.mrb[68].mxu0  ;;  %3955 = vmatprep.subr.bf16.mxu1 %v3954_v15 }
 0x170   :  { %v1262_v61 = vpop.f32.mrb[69].mxu0  ;;  %3957 = vmatpush3.bf16.msra.mxu1 %v3954_v15 }
 0x171   :  { %v3958_v62 = vpack.c.bf16 %v3434_v60, %v1262_v61 }
 0x173   :  { %v3437_v63 = vpop.f32.mrb[70].mxu0  ;;  %3959 = vmatprep.subr.bf16.mxu1 %v3958_v62 }
 0x174   :  { %v1272_v16 = vpop.f32.mrb[71].mxu0  ;;  %3961 = vmatpush3.bf16.msra.mxu1 %v3958_v62 }
 0x175   :  { %v3962_v0 = vpack.c.bf16 %v3437_v63, %v1272_v16 }
 0x177   :  { %v3440_v1 = vpop.f32.mrb[72].mxu0  ;;  %3963 = vmatprep.subr.bf16.mxu1 %v3962_v0 }
 0x178   :  { %v1282_v17 = vpop.f32.mrb[73].mxu0  ;;  %3965 = vmatpush3.bf16.msra.mxu1 %v3962_v0 }
 0x179   :  { %v3966_v20 = vpack.c.bf16 %v3440_v1, %v1282_v17 }
 0x17b   :  { %v3443_v2 = vpop.f32.mrb[74].mxu0  ;;  %3967 = vmatprep.subr.bf16.mxu1 %v3966_v20  ;;  %3529 = vmatmul.mubr.msk.f32.vlgmr.msra.gmra.mrb[28].mxu1 %vm89_vm0, %v4840_v48 }
 0x17c   :  { %v1292_v3 = vpop.f32.mrb[75].mxu0  ;;  %3969 = vmatpush3.bf16.msra.mxu1 %v3966_v20  ;;  %3547 = vmatprep.mubr.msk.f32.mxu1 %vm89_vm0, %v4831_v41 }
 0x17d   :  { %v3970_v21 = vpack.c.bf16 %v3443_v2, %v1292_v3 }
 0x17f   :  { %v3446_v4 = vpop.f32.mrb[76].mxu0  ;;  %3971 = vmatprep.subr.bf16.mxu1 %v3970_v21 }
 0x180   :  { %v1302_v5 = vpop.f32.mrb[77].mxu0  ;;  %3973 = vmatpush3.bf16.msra.mxu1 %v3970_v21 }
 0x181   :  { %v3974_v6 = vpack.c.bf16 %v3446_v4, %v1302_v5 }
 0x183   :  { %v3449_v7 = vpop.f32.mrb[78].mxu0  ;;  %3975 = vmatprep.subr.bf16.mxu1 %v3974_v6 }
 0x184   :  { %v1312_v25 = vpop.f32.mrb[79].mxu0  ;;  %3977 = vmatpush3.bf16.msra.mxu1 %v3974_v6 }
 0x185   :  { %v3978_v9 = vpack.c.bf16 %v3449_v7, %v1312_v25 }
 0x187   :  { %v3452_v10 = vpop.f32.mrb[80].mxu0  ;;  %3979 = vmatprep.subr.bf16.mxu1 %v3978_v9 }
 0x188   :  { %v1322_v8 = vpop.f32.mrb[81].mxu0  ;;  %3981 = vmatpush3.bf16.msra.mxu1 %v3978_v9 }
 0x189   :  { %v3982_v18 = vpack.c.bf16 %v3452_v10, %v1322_v8 }
 0x18b   :  { %v3455_v19 = vpop.f32.mrb[82].mxu0  ;;  %3983 = vmatprep.subr.bf16.mxu1 %v3982_v18  ;;  %3548 = vmatmul.mubr.msk.f32.vlgmr.msra.gmra.mrb[30].mxu1 %vm89_vm0, %v4840_v48 }
 0x18c   :  { %v1332_v23 = vpop.f32.mrb[83].mxu0  ;;  %3985 = vmatpush3.bf16.msra.mxu1 %v3982_v18  ;;  %3566 = vmatprep.mubr.msk.f32.mxu1 %vm89_vm0, %v4831_v41 }
 0x18d   :  { %v3986_v24 = vpack.c.bf16 %v3455_v19, %v1332_v23 }
 0x18f   :  { %v3458_v11 = vpop.f32.mrb[84].mxu0  ;;  %3987 = vmatprep.subr.bf16.mxu1 %v3986_v24 }
 0x190   :  { %v1342_v26 = vpop.f32.mrb[85].mxu0  ;;  %3989 = vmatpush3.bf16.msra.mxu1 %v3986_v24 }
 0x191   :  { %v3990_v27 = vpack.c.bf16 %v3458_v11, %v1342_v26 }
 0x193   :  { %v3461_v28 = vpop.f32.mrb[86].mxu0  ;;  %3991 = vmatprep.subr.bf16.mxu1 %v3990_v27 }
 0x194   :  { %v1352_v29 = vpop.f32.mrb[87].mxu0  ;;  %3993 = vmatpush3.bf16.msra.mxu1 %v3990_v27 }
 0x195   :  { %v3994_v30 = vpack.c.bf16 %v3461_v28, %v1352_v29 }
 0x197   :  { %v3464_v31 = vpop.f32.mrb[88].mxu0  ;;  %3995 = vmatprep.subr.bf16.mxu1 %v3994_v30 }
 0x198   :  { %v1362_v32 = vpop.f32.mrb[89].mxu0  ;;  %3997 = vmatpush3.bf16.msra.mxu1 %v3994_v30 }
 0x199   :  { %v3998_v33 = vpack.c.bf16 %v3464_v31, %v1362_v32 }
 0x19b   :  { %v3467_v34 = vpop.f32.mrb[90].mxu0  ;;  %3999 = vmatprep.subr.bf16.mxu1 %v3998_v33  ;;  %3567 = vmatmul.mubr.msk.f32.vlgmr.msra.gmra.mrb[32].mxu1 %vm89_vm0, %v4840_v48 }
 0x19c   :  { %v1372_v36 = vpop.f32.mrb[91].mxu0  ;;  %4001 = vmatpush3.bf16.msra.mxu1 %v3998_v33  ;;  %3585 = vmatprep.mubr.msk.f32.mxu1 %vm89_vm0, %v4831_v41 }
 0x19d   :  { %v4002_v38 = vpack.c.bf16 %v3467_v34, %v1372_v36 }
 0x19f   :  { %v3470_v39 = vpop.f32.mrb[92].mxu0  ;;  %4003 = vmatprep.subr.bf16.mxu1 %v4002_v38 }
 0x1a0   :  { %v1382_v22 = vpop.f32.mrb[93].mxu0  ;;  %4005 = vmatpush3.bf16.msra.mxu1 %v4002_v38 }
 0x1a1   :  { %v4006_v42 = vpack.c.bf16 %v3470_v39, %v1382_v22 }
 0x1a3   :  { %v3473_v43 = vpop.f32.mrb[94].mxu0  ;;  %4007 = vmatprep.subr.bf16.mxu1 %v4006_v42 }
 0x1a4   :  { %v1392_v35 = vpop.f32.mrb[95].mxu0  ;;  %4009 = vmatpush3.bf16.msra.mxu1 %v4006_v42 }
 0x1a5   :  { %v4010_v44 = vpack.c.bf16 %v3473_v43, %v1392_v35 }
 0x1a7   :  { %4011 = vmatprep.subr.bf16.mxu1 %v4010_v44  ;;  %v3606_v37 = vpop.f32.mrb[96].mxu0 }
 0x1a8   :  { %4013 = vmatpush3.bf16.msra.mxu1 %v4010_v44  ;;  %v1945_v45 = vpop.f32.mrb[97].mxu0 }
 0x1a9   :  { %v4031_v46 = vpack.c.bf16 %v3606_v37, %v1945_v45  ;;  %4030 = vmatprep.subr.bf16.mxu1 %v4105_v47 }
 0x1ab   :  { %3586 = vmatmul.mubr.msk.f32.vlgmr.msra.gmra.mrb[34].mxu1 %vm89_vm0, %v4840_v48  ;;  %v3609_v41 = vpop.f32.mrb[98].mxu0 }
 0x1ac   :  { %4032 = vmatpush3.bf16.msra.mxu1 %v4031_v46  ;;  %v1955_v40 = vpop.f32.mrb[99].mxu0  ;;  %3692 = vmatprep.mubr.msk.f32.mxu1 %vm4106_vm1, %v4107_v49 }
 0x1ad   :  { %v4034_v50 = vpack.c.bf16 %v3609_v41, %v1955_v40  ;;  %4033 = vmatprep.subr.bf16.mxu1 %v4105_v47 }
 0x1af   :  { %v3612_v51 = vpop.f32.mrb[100].mxu0 }
 0x1b0   :  { %4035 = vmatpush3.bf16.msra.mxu1 %v4034_v50  ;;  %v1965_v52 = vpop.f32.mrb[101].mxu0 }
 0x1b1   :  { %v4037_v53 = vpack.c.bf16 %v3612_v51, %v1965_v52  ;;  %4036 = vmatprep.subr.bf16.mxu1 %v4105_v47 }
 0x1b3   :  { %v3615_v54 = vpop.f32.mrb[102].mxu0 }
 0x1b4   :  { %4038 = vmatpush3.bf16.msra.mxu1 %v4037_v53  ;;  %v1975_v48 = vpop.f32.mrb[103].mxu0 }
 0x1b5   :  { %v4040_v55 = vpack.c.bf16 %v3615_v54, %v1975_v48  ;;  %4039 = vmatprep.subr.bf16.mxu1 %v4105_v47 }
 0x1b7   :  { %v3618_v12 = vpop.f32.mrb[104].mxu0 }
 0x1b8   :  { %4041 = vmatpush3.bf16.msra.mxu1 %v4040_v55  ;;  %v1985_v56 = vpop.f32.mrb[105].mxu0 }
 0x1b9   :  { %v4043_v13 = vpack.c.bf16 %v3618_v12, %v1985_v56  ;;  %4042 = vmatprep.subr.bf16.mxu1 %v4105_v47 }
 0x1bb   :  { %v3621_v14 = vpop.f32.mrb[106].mxu0  ;;  %3693 = vmatmul.mubr.msk.f32.vlgmr.msra.gmra.mrb[36].mxu1 %vm89_vm0, %v4873_v57 }
 0x1bc   :  { %4044 = vmatpush3.bf16.msra.mxu1 %v4043_v13  ;;  %v1995_v58 = vpop.f32.mrb[107].mxu0  ;;  %3711 = vmatprep.mubr.msk.f32.mxu1 %vm4106_vm1, %v4107_v49 }
 0x1bd   :  { %v4046_v59 = vpack.c.bf16 %v3621_v14, %v1995_v58  ;;  %4045 = vmatprep.subr.bf16.mxu1 %v4105_v47 }
 0x1bf   :  { %v3624_v15 = vpop.f32.mrb[108].mxu0 }
 0x1c0   :  { %4047 = vmatpush3.bf16.msra.mxu1 %v4046_v59  ;;  %v2005_v60 = vpop.f32.mrb[109].mxu0 }
 0x1c1   :  { %v4049_v61 = vpack.c.bf16 %v3624_v15, %v2005_v60  ;;  %4048 = vmatprep.subr.bf16.mxu1 %v4105_v47 }
 0x1c3   :  { %v3627_v62 = vpop.f32.mrb[110].mxu0 }
 0x1c4   :  { %4050 = vmatpush3.bf16.msra.mxu1 %v4049_v61  ;;  %v2015_v63 = vpop.f32.mrb[111].mxu0 }
 0x1c5   :  { %v4052_v16 = vpack.c.bf16 %v3627_v62, %v2015_v63  ;;  %4051 = vmatprep.subr.bf16.mxu1 %v4105_v47 }
 0x1c7   :  { %v3630_v0 = vpop.f32.mrb[112].mxu0 }
 0x1c8   :  { %4053 = vmatpush3.bf16.msra.mxu1 %v4052_v16  ;;  %v2025_v1 = vpop.f32.mrb[113].mxu0 }
 0x1c9   :  { %v4055_v17 = vpack.c.bf16 %v3630_v0, %v2025_v1  ;;  %4054 = vmatprep.subr.bf16.mxu1 %v4105_v47 }
 0x1cb   :  { %v3633_v20 = vpop.f32.mrb[114].mxu0  ;;  %3712 = vmatmul.mubr.msk.f32.vlgmr.msra.gmra.mrb[38].mxu1 %vm89_vm0, %v4873_v57 }
 0x1cc   :  { %4056 = vmatpush3.bf16.msra.mxu1 %v4055_v17  ;;  %v2035_v2 = vpop.f32.mrb[115].mxu0  ;;  %3730 = vmatprep.mubr.msk.f32.mxu1 %vm4106_vm1, %v4107_v49 }
 0x1cd   :  { %v4058_v3 = vpack.c.bf16 %v3633_v20, %v2035_v2  ;;  %4057 = vmatprep.subr.bf16.mxu1 %v4105_v47 }
 0x1ce   :  { %v3272_v21 = vpop.f32.mrb[0].mxu1 }
 0x1cf   :  { %638 = vst.msk [vmem:[%s5092_s7 + $0x8] sm:$0xff] %vm636_vm2, %v3272_v21  ;;  %v617_v4 = vpop.f32.mrb[1].mxu1  ;;  %v3636_v5 = vpop.f32.mrb[116].mxu0 }
 0x1d0   :  { %637 = vst.msk [vmem:[%s5092_s7] sm:$0xff] %vm636_vm2, %v617_v4  ;;  %4059 = vmatpush3.bf16.msra.mxu1 %v4058_v3  ;;  %v2045_v6 = vpop.f32.mrb[117].mxu0 }
 0x1d1   :  { %v4061_v7 = vpack.c.bf16 %v3636_v5, %v2045_v6  ;;  %4060 = vmatprep.subr.bf16.mxu1 %v4105_v47 }
 0x1d2   :  { %v3275_v25 = vpop.f32.mrb[2].mxu1 }
 0x1d3   :  { %v3639_v9 = vpop.f32.mrb[118].mxu0  ;;  %640 = vst.msk [vmem:[%s5092_s7 + $0x18] sm:$0xff] %vm636_vm2, %v3275_v25  ;;  %v627_v10 = vpop.f32.mrb[3].mxu1 }
 0x1d4   :  { %4062 = vmatpush3.bf16.msra.mxu1 %v4061_v7  ;;  %v2055_v8 = vpop.f32.mrb[119].mxu0  ;;  %639 = vst.msk [vmem:[%s5092_s7 + $0x10] sm:$0xff] %vm636_vm2, %v627_v10 }
 0x1d5   :  { %v4064_v18 = vpack.c.bf16 %v3639_v9, %v2055_v8  ;;  %4063 = vmatprep.subr.bf16.mxu1 %v4105_v47 }
 0x1d7   :  { %v3642_v19 = vpop.f32.mrb[120].mxu0 }
 0x1d8   :  { %4065 = vmatpush3.bf16.msra.mxu1 %v4064_v18  ;;  %v2065_v23 = vpop.f32.mrb[121].mxu0 }
 0x1d9   :  { %v4067_v24 = vpack.c.bf16 %v3642_v19, %v2065_v23  ;;  %4066 = vmatprep.subr.bf16.mxu1 %v4105_v47 }
 0x1db   :  { %v3645_v11 = vpop.f32.mrb[122].mxu0  ;;  %3731 = vmatmul.mubr.msk.f32.vlgmr.msra.gmra.mrb[40].mxu1 %vm89_vm0, %v4873_v57 }
 0x1dc   :  { %4068 = vmatpush3.bf16.msra.mxu1 %v4067_v24  ;;  %v2075_v26 = vpop.f32.mrb[123].mxu0  ;;  %3749 = vmatprep.mubr.msk.f32.mxu1 %vm4106_vm1, %v4107_v49 }
 0x1dd   :  { %v4070_v27 = vpack.c.bf16 %v3645_v11, %v2075_v26  ;;  %4069 = vmatprep.subr.bf16.mxu1 %v4105_v47 }
 0x1de   :  { %v3294_v28 = vpop.f32.mrb[4].mxu1 }
 0x1df   :  { %727 = vst.msk [vmem:[%s5092_s7 + $0x28] sm:$0xff] %vm636_vm2, %v3294_v28  ;;  %v707_v29 = vpop.f32.mrb[5].mxu1  ;;  %v3648_v30 = vpop.f32.mrb[124].mxu0 }
 0x1e0   :  { %726 = vst.msk [vmem:[%s5092_s7 + $0x20] sm:$0xff] %vm636_vm2, %v707_v29  ;;  %4071 = vmatpush3.bf16.msra.mxu1 %v4070_v27  ;;  %v2085_v31 = vpop.f32.mrb[125].mxu0 }
 0x1e1   :  { %v4073_v32 = vpack.c.bf16 %v3648_v30, %v2085_v31  ;;  %4072 = vmatprep.subr.bf16.mxu1 %v4105_v47 }
 0x1e2   :  { %v3297_v33 = vpop.f32.mrb[6].mxu1 }
 0x1e3   :  { %v3651_v34 = vpop.f32.mrb[126].mxu0  ;;  %729 = vst.msk [vmem:[%s5092_s7 + $0x38] sm:$0xff] %vm636_vm2, %v3297_v33  ;;  %v717_v36 = vpop.f32.mrb[7].mxu1 }
 0x1e4   :  { %4074 = vmatpush3.bf16.msra.mxu1 %v4073_v32  ;;  %v2095_v38 = vpop.f32.mrb[127].mxu0  ;;  %728 = vst.msk [vmem:[%s5092_s7 + $0x30] sm:$0xff] %vm636_vm2, %v717_v36 }
 0x1e5   :  { %v4076_v39 = vpack.c.bf16 %v3651_v34, %v2095_v38  ;;  %4075 = vmatprep.subr.bf16.mxu1 %v4105_v47 }
 0x1e7   :  { %v3654_v22 = vpop.f32.mrb[128].mxu0 }
 0x1e8   :  { %4077 = vmatpush3.bf16.msra.mxu1 %v4076_v39  ;;  %v2105_v42 = vpop.f32.mrb[129].mxu0 }
 0x1e9   :  { %v4079_v43 = vpack.c.bf16 %v3654_v22, %v2105_v42  ;;  %4078 = vmatprep.subr.bf16.mxu1 %v4105_v47 }
 0x1eb   :  { %v3657_v35 = vpop.f32.mrb[130].mxu0  ;;  %3750 = vmatmul.mubr.msk.f32.vlgmr.msra.gmra.mrb[42].mxu1 %vm89_vm0, %v4873_v57 }
 0x1ec   :  { %4080 = vmatpush3.bf16.msra.mxu1 %v4079_v43  ;;  %v2115_v44 = vpop.f32.mrb[131].mxu0  ;;  %3768 = vmatprep.mubr.msk.f32.mxu1 %vm4106_vm1, %v4107_v49 }
 0x1ed   :  { %v4082_v37 = vpack.c.bf16 %v3657_v35, %v2115_v44  ;;  %4081 = vmatprep.subr.bf16.mxu1 %v4105_v47 }
 0x1ee   :  { %v3316_v45 = vpop.f32.mrb[8].mxu1 }
 0x1ef   :  { %816 = vst.msk [vmem:[%s5092_s7 + $0x48] sm:$0xff] %vm636_vm2, %v3316_v45  ;;  %v796_v46 = vpop.f32.mrb[9].mxu1  ;;  %v3660_v41 = vpop.f32.mrb[132].mxu0 }
 0x1f0   :  { %815 = vst.msk [vmem:[%s5092_s7 + $0x40] sm:$0xff] %vm636_vm2, %v796_v46  ;;  %4083 = vmatpush3.bf16.msra.mxu1 %v4082_v37  ;;  %v2125_v40 = vpop.f32.mrb[133].mxu0 }
 0x1f1   :  { %v4085_v50 = vpack.c.bf16 %v3660_v41, %v2125_v40  ;;  %4084 = vmatprep.subr.bf16.mxu1 %v4105_v47 }
 0x1f2   :  { %v3319_v51 = vpop.f32.mrb[10].mxu1 }
 0x1f3   :  { %v3663_v52 = vpop.f32.mrb[134].mxu0  ;;  %818 = vst.msk [vmem:[%s5092_s7 + $0x58] sm:$0xff] %vm636_vm2, %v3319_v51  ;;  %v806_v53 = vpop.f32.mrb[11].mxu1 }
 0x1f4   :  { %4086 = vmatpush3.bf16.msra.mxu1 %v4085_v50  ;;  %v2135_v54 = vpop.f32.mrb[135].mxu0  ;;  %817 = vst.msk [vmem:[%s5092_s7 + $0x50] sm:$0xff] %vm636_vm2, %v806_v53 }
 0x1f5   :  { %v4088_v48 = vpack.c.bf16 %v3663_v52, %v2135_v54  ;;  %4087 = vmatprep.subr.bf16.mxu1 %v4105_v47 }
 0x1f7   :  { %v3666_v55 = vpop.f32.mrb[136].mxu0 }
 0x1f8   :  { %4089 = vmatpush3.bf16.msra.mxu1 %v4088_v48  ;;  %v2145_v12 = vpop.f32.mrb[137].mxu0 }
 0x1f9   :  { %v4091_v56 = vpack.c.bf16 %v3666_v55, %v2145_v12  ;;  %4090 = vmatprep.subr.bf16.mxu1 %v4105_v47 }
 0x1fb   :  { %v3669_v13 = vpop.f32.mrb[138].mxu0  ;;  %3769 = vmatmul.mubr.msk.f32.vlgmr.msra.gmra.mrb[44].mxu1 %vm89_vm0, %v4873_v57 }
 0x1fc   :  { %4092 = vmatpush3.bf16.msra.mxu1 %v4091_v56  ;;  %v2155_v14 = vpop.f32.mrb[139].mxu0  ;;  %3787 = vmatprep.mubr.msk.f32.mxu1 %vm4106_vm1, %v4107_v49 }
 0x1fd   :  { %v4094_v58 = vpack.c.bf16 %v3669_v13, %v2155_v14  ;;  %4093 = vmatprep.subr.bf16.mxu1 %v4105_v47 }
 0x1fe   :  { %v3338_v59 = vpop.f32.mrb[12].mxu1 }
 0x1ff   :  { %905 = vst.msk [vmem:[%s5092_s7 + $0x68] sm:$0xff] %vm636_vm2, %v3338_v59  ;;  %v885_v15 = vpop.f32.mrb[13].mxu1  ;;  %v3672_v60 = vpop.f32.mrb[140].mxu0 }
 0x200   :  { %904 = vst.msk [vmem:[%s5092_s7 + $0x60] sm:$0xff] %vm636_vm2, %v885_v15  ;;  %4095 = vmatpush3.bf16.msra.mxu1 %v4094_v58  ;;  %v2165_v61 = vpop.f32.mrb[141].mxu0 }
 0x201   :  { %v4097_v62 = vpack.c.bf16 %v3672_v60, %v2165_v61  ;;  %4096 = vmatprep.subr.bf16.mxu1 %v4105_v47 }
 0x202   :  { %v3341_v49 = vpop.f32.mrb[14].mxu1 }
 0x203   :  { %v3675_v63 = vpop.f32.mrb[142].mxu0  ;;  %907 = vst.msk [vmem:[%s5092_s7 + $0x78] sm:$0xff] %vm636_vm2, %v3341_v49  ;;  %v895_v16 = vpop.f32.mrb[15].mxu1 }
 0x204   :  { %4098 = vmatpush3.bf16.msra.mxu1 %v4097_v62  ;;  %v2175_v0 = vpop.f32.mrb[143].mxu0  ;;  %906 = vst.msk [vmem:[%s5092_s7 + $0x70] sm:$0xff] %vm636_vm2, %v895_v16 }
 0x205   :  { %v4100_v1 = vpack.c.bf16 %v3675_v63, %v2175_v0  ;;  %4099 = vmatprep.subr.bf16.mxu1 %v4105_v47 }
 0x208   :  { %4101 = vmatpush3.bf16.msra.mxu1 %v4100_v1 }
 0x20b   :  { %3788 = vmatmul.mubr.msk.f32.vlgmr.msra.gmra.mrb[46].mxu1 %vm89_vm0, %v4873_v57 }
 0x20e   :  { %v3360_v17 = vpop.f32.mrb[16].mxu1 }
 0x20f   :  { %994 = vst.msk [vmem:[%s5092_s7 + $0x88] sm:$0xff] %vm636_vm2, %v3360_v17  ;;  %v974_v20 = vpop.f32.mrb[17].mxu1 }
 0x210   :  { %993 = vst.msk [vmem:[%s5092_s7 + $0x80] sm:$0xff] %vm636_vm2, %v974_v20 }
 0x212   :  { %v3363_v2 = vpop.f32.mrb[18].mxu1 }
 0x213   :  { %996 = vst.msk [vmem:[%s5092_s7 + $0x98] sm:$0xff] %vm636_vm2, %v3363_v2  ;;  %v984_v47 = vpop.f32.mrb[19].mxu1 }
 0x214   :  { %995 = vst.msk [vmem:[%s5092_s7 + $0x90] sm:$0xff] %vm636_vm2, %v984_v47 }
 0x21e   :  { %v3382_v57 = vpop.f32.mrb[20].mxu1 }
 0x21f   :  { %1083 = vst.msk [vmem:[%s5092_s7 + $0xa8] sm:$0xff] %vm636_vm2, %v3382_v57  ;;  %v1063_v3 = vpop.f32.mrb[21].mxu1 }
 0x220   :  { %1082 = vst.msk [vmem:[%s5092_s7 + $0xa0] sm:$0xff] %vm636_vm2, %v1063_v3 }
 0x222   :  { %v3385_v21 = vpop.f32.mrb[22].mxu1 }
 0x223   :  { %1085 = vst.msk [vmem:[%s5092_s7 + $0xb8] sm:$0xff] %vm636_vm2, %v3385_v21  ;;  %v1073_v4 = vpop.f32.mrb[23].mxu1 }
 0x224   :  { %1084 = vst.msk [vmem:[%s5092_s7 + $0xb0] sm:$0xff] %vm636_vm2, %v1073_v4 }
 0x22e   :  { %v3492_v5 = vpop.f32.mrb[24].mxu1 }
 0x22f   :  { %1484 = vst.msk [vmem:[%s5093_s8 + $0x8] sm:$0xff] %vm1482_vm3, %v3492_v5  ;;  %v1473_v6 = vpop.f32.mrb[25].mxu1 }
 0x230   :  { %1483 = vst.msk [vmem:[%s5093_s8] sm:$0xff] %vm1482_vm3, %v1473_v6 }
 0x23e   :  { %v3511_v7 = vpop.f32.mrb[26].mxu1 }
 0x23f   :  { %1561 = vst.msk [vmem:[%s5093_s8 + $0x18] sm:$0xff] %vm1482_vm3, %v3511_v7  ;;  %v1551_v25 = vpop.f32.mrb[27].mxu1 }
 0x240   :  { %1560 = vst.msk [vmem:[%s5093_s8 + $0x10] sm:$0xff] %vm1482_vm3, %v1551_v25 }
 0x24e   :  { %v3530_v9 = vpop.f32.mrb[28].mxu1 }
 0x24f   :  { %1638 = vst.msk [vmem:[%s5093_s8 + $0x28] sm:$0xff] %vm1482_vm3, %v3530_v9  ;;  %v1628_v10 = vpop.f32.mrb[29].mxu1 }
 0x250   :  { %1637 = vst.msk [vmem:[%s5093_s8 + $0x20] sm:$0xff] %vm1482_vm3, %v1628_v10 }
 0x25e   :  { %v3549_v8 = vpop.f32.mrb[30].mxu1 }
 0x25f   :  { %1715 = vst.msk [vmem:[%s5093_s8 + $0x38] sm:$0xff] %vm1482_vm3, %v3549_v8  ;;  %v1705_v18 = vpop.f32.mrb[31].mxu1 }
 0x260   :  { %1714 = vst.msk [vmem:[%s5093_s8 + $0x30] sm:$0xff] %vm1482_vm3, %v1705_v18 }
 0x26e   :  { %v3568_v19 = vpop.f32.mrb[32].mxu1 }
 0x26f   :  { %1792 = vst.msk [vmem:[%s5093_s8 + $0x48] sm:$0xff] %vm1482_vm3, %v3568_v19  ;;  %v1782_v23 = vpop.f32.mrb[33].mxu1 }
 0x270   :  { %1791 = vst.msk [vmem:[%s5093_s8 + $0x40] sm:$0xff] %vm1482_vm3, %v1782_v23 }
 0x27e   :  { %v3587_v24 = vpop.f32.mrb[34].mxu1 }
 0x27f   :  { %1869 = vst.msk [vmem:[%s5093_s8 + $0x58] sm:$0xff] %vm1482_vm3, %v3587_v24  ;;  %v1859_v11 = vpop.f32.mrb[35].mxu1 }
 0x280   :  { %1868 = vst.msk [vmem:[%s5093_s8 + $0x50] sm:$0xff] %vm1482_vm3, %v1859_v11 }
 0x28e   :  { %v2253_v26 = vpop.f32.mrb[36].mxu1 }
 0x28f   :  { %2258 = vst.msk [vmem:[%s5094_s9] sm:$0xff] %vm2257_vm4, %v2253_v26  ;;  %v3694_v27 = vpop.f32.mrb[37].mxu1 }
 0x29e   :  { %v2325_v28 = vpop.f32.mrb[38].mxu1 }
 0x29f   :  { %2329 = vst.msk [vmem:[%s5094_s9 + $0x8] sm:$0xff] %vm2257_vm4, %v2325_v28  ;;  %v3713_v29 = vpop.f32.mrb[39].mxu1 }
 0x2ae   :  { %v2396_v30 = vpop.f32.mrb[40].mxu1 }
 0x2af   :  { %2400 = vst.msk [vmem:[%s5094_s9 + $0x10] sm:$0xff] %vm2257_vm4, %v2396_v30  ;;  %v3732_v31 = vpop.f32.mrb[41].mxu1 }
 0x2be   :  { %v2467_v32 = vpop.f32.mrb[42].mxu1 }
 0x2bf   :  { %2471 = vst.msk [vmem:[%s5094_s9 + $0x18] sm:$0xff] %vm2257_vm4, %v2467_v32  ;;  %v3751_v33 = vpop.f32.mrb[43].mxu1 }
 0x2ce   :  { %v2538_v34 = vpop.f32.mrb[44].mxu1 }
 0x2cf   :  { %2542 = vst.msk [vmem:[%s5094_s9 + $0x20] sm:$0xff] %vm2257_vm4, %v2538_v34  ;;  %v3770_v36 = vpop.f32.mrb[45].mxu1 }
 0x2de   :  { %v2609_v38 = vpop.f32.mrb[46].mxu1 }
 0x2df   :  { %2613 = vst.msk [vmem:[%s5094_s9 + $0x28] sm:$0xff] %vm2257_vm4, %v2609_v38  ;;  %v3789_v39 = vpop.f32.mrb[47].mxu1 }

</bundles_post_ra>
